<compile_context>
chip_gen: v5e
topology: v5e:2x2
jax: 0.10.0
libtpu: 0.0.40
codegen_flags: <defaults>
</compile_context>

<pallas_src>
import functools
import jax
import jax.numpy as jnp
from jax.experimental import pallas as pl
from jax.experimental.pallas import tpu as pltpu

# ----------------------- small Phi-like config -----------------------------
VOCAB = 128
HIDDEN = 64
N_HEADS = 4
N_KV_HEADS = 4                        # Phi: num_kv_heads == num_heads
HEAD_DIM = HIDDEN // N_HEADS          # 16
PARTIAL_ROTARY = 0.5
ROTARY_DIM = int(PARTIAL_ROTARY * HEAD_DIM)   # 8
ROTARY_HALF = ROTARY_DIM // 2                 # 4
INTERMEDIATE = 256
N_LAYERS = 2
EPS = 1e-5
ROPE_THETA = 10000.0
SEQ = 8
SOFTMAX_SCALE = HEAD_DIM ** (-0.5)
DTYPE = jnp.bfloat16                  # MXU operand dtype; f32 accumulation in-kernel
VMEM_LIMIT_BYTES = 32 * 1024 * 1024   # safe on v5e/v6e/v7x at this size


# --------------------------- in-kernel helpers ------------------------------
def _erf_f32(x):
    """Abramowitz–Stegun 7.1.26 erf approximation (|abs err| < 1.5e-7, f32)."""
    p = 0.3275911
    a1, a2, a3, a4, a5 = (0.254829592, -0.284496736, 1.421413741,
                          -1.453152027, 1.061405429)
    ax = jnp.abs(x)
    t = 1.0 / (1.0 + p * ax)
    poly = ((((a5 * t + a4) * t + a3) * t + a2) * t + a1) * t
    y = 1.0 - poly * jnp.exp(-ax * ax)
    return jnp.where(x >= 0.0, y, -y)


def _gelu_exact_f32(x):
    """Exact (erf) GELU — matches the reference lambda for 'gelu_new'."""
    return 0.5 * x * (1.0 + _erf_f32(x * 0.7071067811865475))


def _layernorm_f32(h, g_ref, b_ref, eps):
    mean = jnp.mean(h, axis=-1, keepdims=True)
    cent = h - mean
    var = jnp.mean(cent * cent, axis=-1, keepdims=True)
    normed = cent * jax.lax.rsqrt(var + eps)
    return normed * g_ref[...].astype(jnp.float32) + b_ref[...].astype(jnp.float32)


# ----------------------------- Pallas kernels ------------------------------
def _phi_layer_kernel(hx_ref, cos_ref, sin_ref,
                      ln_g, ln_b, qkv_w, qkv_b, dense_w, dense_b,
                      fc1_w, fc1_b, fc2_w, fc2_b,
                      out_ref, attn_buf, *,
                      has_residual, hidden_size, eps, n_heads, n_kv_heads,
                      head_dim, rotary_dim, softmax_scale):
    """Fully fused FlashPhiLayer (prefill): LN(+residual) -> QKV -> partial
    RoPE -> causal attention -> dense, parallel MLP, packed (h, res) output."""
    cdt = hx_ref.dtype                              # bf16 MXU operand dtype

    hx = hx_ref[...].astype(jnp.float32)
    if has_residual:
        h = hx[:, :hidden_size] + hx[:, hidden_size:]   # hidden + residual
    else:
        h = hx                                          # residual=None semantics

    # --- FastLayerNorm (f32 math) ---
    normed_f32 = _layernorm_f32(h, ln_g, ln_b, eps)
    normed = normed_f32.astype(cdt)

    # --- fused QKV projection (bias) ---
    qkv = (jnp.dot(normed, qkv_w[...], preferred_element_type=jnp.float32)
           + qkv_b[...].astype(jnp.float32))            # (T, (H+2Hkv)*D) f32
    qd = n_heads * head_dim
    kd = n_kv_heads * head_dim
    q = qkv[:, :qd]
    k = qkv[:, qd:qd + kd]
    v = qkv[:, qd + kd:qd + 2 * kd]

    # --- partial-rotary RoPE (NeoX rotate-half) via lane rolls ------------
    # Only (T, head_dim) cos/sin arrive; masked -sin/+sin variants and the
    # per-head tiling are derived here (cheap VPU/XLU filler under the MXU).
    half = rotary_dim // 2
    cos_h = cos_ref[...]                                # (T, D): [cos, cos, 1..]
    sin_h = sin_ref[...]                                # (T, D): [sin, sin, 0..]
    lane = jax.lax.broadcasted_iota(jnp.int32, cos_h.shape, 1)
    sina_h = jnp.where(lane < half, -sin_h, 0.0)        # [-sin, 0 ...]
    sinb_h = jnp.where((lane >= half) & (lane < rotary_dim), sin_h, 0.0)
    cos_f = jnp.concatenate([cos_h] * n_heads, axis=-1)     # (T, qd)
    sina_f = jnp.concatenate([sina_h] * n_heads, axis=-1)
    sinb_f = jnp.concatenate([sinb_h] * n_heads, axis=-1)

    def rope(t):
        n = t.shape[-1]
        lo = pltpu.roll(t, n - half, axis=1)            # lane d <- t[d + half]
        hi = pltpu.roll(t, half, axis=1)                # lane d <- t[d - half]
        return t * cos_f[:, :n] + lo * sina_f[:, :n] + hi * sinb_f[:, :n]

    q = rope(q)
    k = rope(k)

    # --- causal attention: per-head outputs written into f32 VMEM scratch ---
    T = q.shape[0]
    row = jax.lax.broadcasted_iota(jnp.int32, (T, T), 0)
    col = jax.lax.broadcasted_iota(jnp.int32, (T, T), 1)
    causal = col <= row
    neg = jnp.float32(-1e30)

    groups = n_heads // n_kv_heads
    q_bf = q.astype(cdt)
    k_bf = k.astype(cdt)
    v_bf = v.astype(cdt)
    for hh in range(n_heads):                           # GQA via head indexing
        kvh = hh // groups
        qh = q_bf[:, hh * head_dim:(hh + 1) * head_dim]
        kh = k_bf[:, kvh * head_dim:(kvh + 1) * head_dim]
        vh = v_bf[:, kvh * head_dim:(kvh + 1) * head_dim]
        s = jax.lax.dot_general(qh, kh, (((1,), (1,)), ((), ())),
                                preferred_element_type=jnp.float32)
        s = s * softmax_scale
        s = jnp.where(causal, s, neg)
        s = s - jnp.max(s, axis=-1, keepdims=True)
        p = jnp.exp(s)
        p = p * pl.reciprocal(jnp.sum(p, axis=-1, keepdims=True), approx=True)
        attn_buf[:, hh * head_dim:(hh + 1) * head_dim] = jnp.dot(
            p.astype(cdt), vh, preferred_element_type=jnp.float32)

    attn = attn_buf[...].astype(cdt)                    # (T, qd) one read, one dense
    attn_out = (jnp.dot(attn, dense_w[...], preferred_element_type=jnp.float32)
                + dense_b[...].astype(jnp.float32))

    # --- parallel MLP on the same layer-normed input (Phi architecture) ---
    m = (jnp.dot(normed, fc1_w[...], preferred_element_type=jnp.float32)
         + fc1_b[...].astype(jnp.float32))
    m = _gelu_exact_f32(m).astype(cdt)                  # exact-gelu, f32 math
    mlp_out = (jnp.dot(m, fc2_w[...], preferred_element_type=jnp.float32)
               + fc2_b[...].astype(jnp.float32))

    # resid_dropout is identity at inference.  Pack (h_new, residual) into one
    # lane-dense (T, 2*hidden = 128) slab: single unmasked full-lane store.
    h_new = attn_out + mlp_out
    out_ref[...] = jnp.concatenate([h_new, h], axis=-1).astype(out_ref.dtype)


def _final_kernel(hx_ref, g_ref, b_ref, w_ref, bias_ref, logits_ref, *,
                  eps, hidden_size):
    """Fused final LayerNorm(hidden, residual) + lm_head projection (f32 out)."""
    hx = hx_ref[...].astype(jnp.float32)
    h = hx[:, :hidden_size] + hx[:, hidden_size:]
    normed = _layernorm_f32(h, g_ref, b_ref, eps).astype(hx_ref.dtype)
    logits = (jnp.dot(normed, w_ref[...], preferred_element_type=jnp.float32)
              + bias_ref[...].astype(jnp.float32))
    logits_ref[...] = logits.astype(logits_ref.dtype)   # f32 logits


# ------------------------------ model glue ---------------------------------
def _vmem_specs(n):
    return [pl.BlockSpec(memory_space=pltpu.MemorySpace.VMEM) for _ in range(n)]


def phi_layer(carry, lp, cos_h, sin_h, has_residual):
    T = carry.shape[0]
    kernel = functools.partial(
        _phi_layer_kernel, has_residual=has_residual, hidden_size=HIDDEN,
        eps=EPS, n_heads=N_HEADS, n_kv_heads=N_KV_HEADS, head_dim=HEAD_DIM,
        rotary_dim=ROTARY_DIM, softmax_scale=SOFTMAX_SCALE)
    args = [carry, cos_h, sin_h,
            lp["ln_g"], lp["ln_b"], lp["qkv_w"], lp["qkv_b"],
            lp["dense_w"], lp["dense_b"], lp["fc1_w"], lp["fc1_b"],
            lp["fc2_w"], lp["fc2_b"]]
    return pl.pallas_call(
        kernel,
        out_shape=jax.ShapeDtypeStruct((T, 2 * HIDDEN), carry.dtype),
        in_specs=_vmem_specs(len(args)),
        out_specs=pl.BlockSpec(memory_space=pltpu.MemorySpace.VMEM),
        scratch_shapes=[pltpu.VMEM((T, N_HEADS * HEAD_DIM), jnp.float32)],
        # Keep the residual/hidden slab in the same HBM buffer across layers.
        input_output_aliases=({0: 0} if has_residual else {}),
        compiler_params=pltpu.CompilerParams(vmem_limit_bytes=VMEM_LIMIT_BYTES),
    )(*args)


def final_norm_lm_head(slab, params):
    n = slab.shape[0]
    args = [slab, params["final_ln_g"], params["final_ln_b"],
            params["lm_head_w"], params["lm_head_b"]]
    return pl.pallas_call(
        functools.partial(_final_kernel, eps=EPS, hidden_size=HIDDEN),
        out_shape=jax.ShapeDtypeStruct((n, VOCAB), jnp.float32),
        in_specs=_vmem_specs(len(args)),
        out_specs=pl.BlockSpec(memory_space=pltpu.MemorySpace.VMEM),
        compiler_params=pltpu.CompilerParams(vmem_limit_bytes=VMEM_LIMIT_BYTES),
    )(*args)


def _rope_tables(position_ids):
    """Per-head-width (T, head_dim) cos / sin tables only."""
    T = position_ids.shape[0]
    inv_freq = 1.0 / (ROPE_THETA ** (jnp.arange(0, ROTARY_DIM, 2,
                                                dtype=jnp.float32) / ROTARY_DIM))
    freqs = position_ids.astype(jnp.float32)[:, None] * inv_freq[None, :]  # (T, half)
    cos = jnp.cos(freqs)
    sin = jnp.sin(freqs)
    tail = HEAD_DIM - ROTARY_DIM
    cos_h = jnp.concatenate([cos, cos, jnp.ones((T, tail), jnp.float32)], axis=-1)
    sin_h = jnp.concatenate([sin, sin, jnp.zeros((T, tail), jnp.float32)], axis=-1)
    return cos_h, sin_h


def forward(params, input_ids, position_ids, lm_head_indices):
    # token embedding (gather kept as JAX glue)
    carry = params["embed"][input_ids]                  # (T, HIDDEN) bf16

    cos_h, sin_h = _rope_tables(position_ids)

    for i, lp in enumerate(params["layers"]):
        carry = phi_layer(carry, lp, cos_h, sin_h, has_residual=(i > 0))
        # carry is now the packed (T, 2*HIDDEN) [hidden | residual] slab.

    # Gather requested tokens BEFORE the final LN + lm_head (cuts lm_head
    # FLOPs / HBM writeback by T/len(indices)); value-identical to slicing
    # the logits afterwards.
    if lm_head_indices is not None:
        carry = carry[lm_head_indices]

    return final_norm_lm_head(carry, params)            # f32 logits


# --------------------------- deterministic init -----------------------------
def make_params(key):
    def nxt():
        nonlocal key
        key, sub = jax.random.split(key)
        return sub

    def w(shape, scale=0.02, dtype=DTYPE):
        return (scale * jax.random.normal(nxt(), shape, dtype=jnp.float32)).astype(dtype)

    params = {
        "embed": w((VOCAB, HIDDEN)),
        "final_ln_g": jnp.ones((1, HIDDEN), jnp.float32),
        "final_ln_b": jnp.zeros((1, HIDDEN), jnp.float32),
        "lm_head_w": w((HIDDEN, VOCAB)),
        "lm_head_b": jnp.zeros((1, VOCAB), jnp.float32),
        "layers": [],
    }
    qkv_out = (N_HEADS + 2 * N_KV_HEADS) * HEAD_DIM
    for _ in range(N_LAYERS):
        params["layers"].append({
            "ln_g": jnp.ones((1, HIDDEN), jnp.float32),
            "ln_b": jnp.zeros((1, HIDDEN), jnp.float32),
            "qkv_w": w((HIDDEN, qkv_out)),
            "qkv_b": w((1, qkv_out), dtype=jnp.float32),
            "dense_w": w((HIDDEN, HIDDEN)),
            "dense_b": w((1, HIDDEN), dtype=jnp.float32),
            "fc1_w": w((HIDDEN, INTERMEDIATE)),
            "fc1_b": w((1, INTERMEDIATE), dtype=jnp.float32),
            "fc2_w": w((INTERMEDIATE, HIDDEN)),
            "fc2_b": w((1, HIDDEN), dtype=jnp.float32),
        })
    return params


# --------------------------------- main --------------------------------------
if __name__ == "__main__":
    key = jax.random.PRNGKey(0)
    params = make_params(key)

    key, k_ids = jax.random.split(key)
    input_ids = jax.random.randint(k_ids, (SEQ,), 0, VOCAB, dtype=jnp.int32)
    position_ids = jnp.arange(SEQ, dtype=jnp.int32)
    lm_head_indices = jnp.array([SEQ - 1], dtype=jnp.int32)  # last token only

    fwd = jax.jit(forward)
    logits = fwd(params, input_ids, position_ids, lm_head_indices)
    jax.block_until_ready(logits)

    assert logits.shape == (1, VOCAB), logits.shape
    assert logits.dtype == jnp.float32, logits.dtype
    assert bool(jnp.all(jnp.isfinite(logits)))
    print("KERNEL_OK")
</pallas_src>

<mosaic_0001>
module attributes {stable_mosaic.version = 11 : i64} {
  func.func @_phi_layer_kernel(%arg0: memref<8x128xbf16, #tpu.memory_space<vmem>>, %arg1: memref<8x16xf32, #tpu.memory_space<vmem>>, %arg2: memref<8x16xf32, #tpu.memory_space<vmem>>, %arg3: memref<1x64xf32, #tpu.memory_space<vmem>>, %arg4: memref<1x64xf32, #tpu.memory_space<vmem>>, %arg5: memref<64x192xbf16, #tpu.memory_space<vmem>>, %arg6: memref<1x192xf32, #tpu.memory_space<vmem>>, %arg7: memref<64x64xbf16, #tpu.memory_space<vmem>>, %arg8: memref<1x64xf32, #tpu.memory_space<vmem>>, %arg9: memref<64x256xbf16, #tpu.memory_space<vmem>>, %arg10: memref<1x256xf32, #tpu.memory_space<vmem>>, %arg11: memref<256x64xbf16, #tpu.memory_space<vmem>>, %arg12: memref<1x64xf32, #tpu.memory_space<vmem>>, %arg13: memref<8x128xbf16, #tpu.memory_space<vmem>>, %arg14: memref<8x64xf32, #tpu.memory_space<vmem>>) attributes {dimension_semantics = [], scalar_prefetch = 0 : i64, scratch_operands = 1 : i64, tpu.core_type = #tpu.core_type<tc>} {
    %c0 = arith.constant 0 : index
    %c0_0 = arith.constant 0 : index
    %0 = vector.load %arg0[%c0, %c0_0] : memref<8x128xbf16, #tpu.memory_space<vmem>>, vector<8x128xbf16>
    %1 = arith.extf %0 : vector<8x128xbf16> to vector<8x128xf32>
    %2 = vector.extract_strided_slice %1 {offsets = [0, 0], sizes = [8, 64], strides = [1, 1]} : vector<8x128xf32> to vector<8x64xf32>
    %3 = vector.extract_strided_slice %1 {offsets = [0, 64], sizes = [8, 64], strides = [1, 1]} : vector<8x128xf32> to vector<8x64xf32>
    %4 = arith.addf %2, %3 : vector<8x64xf32>
    %cst = arith.constant dense<0.000000e+00> : vector<8xf32>
    %5 = vector.multi_reduction <add>, %4, %cst [1] : vector<8x64xf32> to vector<8xf32>
    %6 = vector.shape_cast %5 : vector<8xf32> to vector<8x1xf32>
    %cst_1 = arith.constant 6.400000e+01 : f32
    %7 = vector.broadcast %cst_1 : f32 to vector<8x1xf32>
    %8 = arith.divf %6, %7 : vector<8x1xf32>
    %9 = vector.broadcast %8 : vector<8x1xf32> to vector<8x64xf32>
    %10 = arith.subf %4, %9 : vector<8x64xf32>
    %11 = arith.mulf %10, %10 : vector<8x64xf32>
    %cst_2 = arith.constant dense<0.000000e+00> : vector<8xf32>
    %12 = vector.multi_reduction <add>, %11, %cst_2 [1] : vector<8x64xf32> to vector<8xf32>
    %13 = vector.shape_cast %12 : vector<8xf32> to vector<8x1xf32>
    %cst_3 = arith.constant 6.400000e+01 : f32
    %14 = vector.broadcast %cst_3 : f32 to vector<8x1xf32>
    %15 = arith.divf %13, %14 : vector<8x1xf32>
    %cst_4 = arith.constant 9.99999974E-6 : f32
    %16 = vector.broadcast %cst_4 : f32 to vector<8x1xf32>
    %17 = arith.addf %15, %16 : vector<8x1xf32>
    %18 = math.rsqrt %17 : vector<8x1xf32>
    %19 = vector.broadcast %18 : vector<8x1xf32> to vector<8x64xf32>
    %20 = arith.mulf %10, %19 : vector<8x64xf32>
    %c0_5 = arith.constant 0 : index
    %c0_6 = arith.constant 0 : index
    %21 = vector.load %arg3[%c0_5, %c0_6] : memref<1x64xf32, #tpu.memory_space<vmem>>, vector<1x64xf32>
    %22 = vector.broadcast %21 : vector<1x64xf32> to vector<8x64xf32>
    %23 = arith.mulf %20, %22 : vector<8x64xf32>
    %c0_7 = arith.constant 0 : index
    %c0_8 = arith.constant 0 : index
    %24 = vector.load %arg4[%c0_7, %c0_8] : memref<1x64xf32, #tpu.memory_space<vmem>>, vector<1x64xf32>
    %25 = vector.broadcast %24 : vector<1x64xf32> to vector<8x64xf32>
    %26 = arith.addf %23, %25 : vector<8x64xf32>
    %27 = arith.truncf %26 : vector<8x64xf32> to vector<8x64xbf16>
    %c0_9 = arith.constant 0 : index
    %c0_10 = arith.constant 0 : index
    %28 = vector.load %arg5[%c0_9, %c0_10] : memref<64x192xbf16, #tpu.memory_space<vmem>>, vector<64x192xbf16>
    %cst_11 = arith.constant dense<0.000000e+00> : vector<8x192xf32>
    %29 = tpu.matmul %27, %28, %cst_11 {dimension_numbers = #tpu.dot_dimension_numbers<[1], [0], [0], [1], [0, 0, 1, 1], [], []>} : vector<8x64xbf16>, vector<64x192xbf16>, vector<8x192xf32> -> vector<8x192xf32>
    %c0_12 = arith.constant 0 : index
    %c0_13 = arith.constant 0 : index
    %30 = vector.load %arg6[%c0_12, %c0_13] : memref<1x192xf32, #tpu.memory_space<vmem>>, vector<1x192xf32>
    %31 = vector.broadcast %30 : vector<1x192xf32> to vector<8x192xf32>
    %32 = arith.addf %29, %31 : vector<8x192xf32>
    %33 = vector.extract_strided_slice %32 {offsets = [0, 0], sizes = [8, 64], strides = [1, 1]} : vector<8x192xf32> to vector<8x64xf32>
    %34 = vector.extract_strided_slice %32 {offsets = [0, 64], sizes = [8, 64], strides = [1, 1]} : vector<8x192xf32> to vector<8x64xf32>
    %35 = vector.extract_strided_slice %32 {offsets = [0, 128], sizes = [8, 64], strides = [1, 1]} : vector<8x192xf32> to vector<8x64xf32>
    %c0_14 = arith.constant 0 : index
    %c0_15 = arith.constant 0 : index
    %36 = vector.load %arg1[%c0_14, %c0_15] : memref<8x16xf32, #tpu.memory_space<vmem>>, vector<8x16xf32>
    %c0_16 = arith.constant 0 : index
    %c0_17 = arith.constant 0 : index
    %37 = vector.load %arg2[%c0_16, %c0_17] : memref<8x16xf32, #tpu.memory_space<vmem>>, vector<8x16xf32>
    %38 = tpu.iota {dimensions = array<i32: 1>} : vector<8x16xi32>
    %c4_i32 = arith.constant 4 : i32
    %39 = vector.broadcast %c4_i32 : i32 to vector<8x16xi32>
    %40 = arith.cmpi slt, %38, %39 : vector<8x16xi32>
    %cst_18 = arith.constant 0.000000e+00 : f32
    %41 = vector.broadcast %cst_18 : f32 to vector<8x16xf32>
    %42 = arith.subf %41, %37 : vector<8x16xf32>
    %cst_19 = arith.constant 0.000000e+00 : f32
    %43 = vector.broadcast %cst_19 : f32 to vector<8x16xf32>
    %44 = arith.select %40, %42, %43 : vector<8x16xi1>, vector<8x16xf32>
    %c4_i32_20 = arith.constant 4 : i32
    %45 = vector.broadcast %c4_i32_20 : i32 to vector<8x16xi32>
    %46 = arith.cmpi sge, %38, %45 : vector<8x16xi32>
    %c8_i32 = arith.constant 8 : i32
    %47 = vector.broadcast %c8_i32 : i32 to vector<8x16xi32>
    %48 = arith.cmpi slt, %38, %47 : vector<8x16xi32>
    %49 = arith.andi %46, %48 : vector<8x16xi1>
    %cst_21 = arith.constant 0.000000e+00 : f32
    %50 = vector.broadcast %cst_21 : f32 to vector<8x16xf32>
    %51 = arith.select %49, %37, %50 : vector<8x16xi1>, vector<8x16xf32>
    %52 = tpu.concatenate %36, %36, %36, %36 in 1 : vector<8x16xf32>, vector<8x16xf32>, vector<8x16xf32>, vector<8x16xf32> -> vector<8x64xf32>
    %53 = tpu.concatenate %44, %44, %44, %44 in 1 : vector<8x16xf32>, vector<8x16xf32>, vector<8x16xf32>, vector<8x16xf32> -> vector<8x64xf32>
    %54 = tpu.concatenate %51, %51, %51, %51 in 1 : vector<8x16xf32>, vector<8x16xf32>, vector<8x16xf32>, vector<8x16xf32> -> vector<8x64xf32>
    %c60_i32 = arith.constant 60 : i32
    %55 = tpu.dynamic_rotate %33 by %c60_i32 dim 1 : vector<8x64xf32>, i32 -> vector<8x64xf32>
    %c4_i32_22 = arith.constant 4 : i32
    %56 = tpu.dynamic_rotate %33 by %c4_i32_22 dim 1 : vector<8x64xf32>, i32 -> vector<8x64xf32>
    %57 = arith.mulf %33, %52 : vector<8x64xf32>
    %58 = arith.mulf %55, %53 : vector<8x64xf32>
    %59 = arith.addf %57, %58 : vector<8x64xf32>
    %60 = arith.mulf %56, %54 : vector<8x64xf32>
    %61 = arith.addf %59, %60 : vector<8x64xf32>
    %c60_i32_23 = arith.constant 60 : i32
    %62 = tpu.dynamic_rotate %34 by %c60_i32_23 dim 1 : vector<8x64xf32>, i32 -> vector<8x64xf32>
    %c4_i32_24 = arith.constant 4 : i32
    %63 = tpu.dynamic_rotate %34 by %c4_i32_24 dim 1 : vector<8x64xf32>, i32 -> vector<8x64xf32>
    %64 = arith.mulf %34, %52 : vector<8x64xf32>
    %65 = arith.mulf %62, %53 : vector<8x64xf32>
    %66 = arith.addf %64, %65 : vector<8x64xf32>
    %67 = arith.mulf %63, %54 : vector<8x64xf32>
    %68 = arith.addf %66, %67 : vector<8x64xf32>
    %69 = tpu.iota {dimensions = array<i32: 0>} : vector<8x8xi32>
    %70 = tpu.iota {dimensions = array<i32: 1>} : vector<8x8xi32>
    %71 = arith.cmpi sle, %70, %69 : vector<8x8xi32>
    %72 = arith.truncf %61 : vector<8x64xf32> to vector<8x64xbf16>
    %73 = arith.truncf %68 : vector<8x64xf32> to vector<8x64xbf16>
    %74 = arith.truncf %35 : vector<8x64xf32> to vector<8x64xbf16>
    %75 = vector.extract_strided_slice %72 {offsets = [0, 0], sizes = [8, 16], strides = [1, 1]} : vector<8x64xbf16> to vector<8x16xbf16>
    %76 = vector.extract_strided_slice %73 {offsets = [0, 0], sizes = [8, 16], strides = [1, 1]} : vector<8x64xbf16> to vector<8x16xbf16>
    %77 = vector.extract_strided_slice %74 {offsets = [0, 0], sizes = [8, 16], strides = [1, 1]} : vector<8x64xbf16> to vector<8x16xbf16>
    %cst_25 = arith.constant dense<0.000000e+00> : vector<8x8xf32>
    %78 = tpu.matmul %75, %76, %cst_25 {dimension_numbers = #tpu.dot_dimension_numbers<[1], [1], [0], [0], [0, 0, 1, 0], [], []>} : vector<8x16xbf16>, vector<8x16xbf16>, vector<8x8xf32> -> vector<8x8xf32>
    %cst_26 = arith.constant 2.500000e-01 : f32
    %79 = vector.broadcast %cst_26 : f32 to vector<8x8xf32>
    %80 = arith.mulf %78, %79 : vector<8x8xf32>
    %cst_27 = arith.constant -1.000000e+30 : f32
    %81 = vector.broadcast %cst_27 : f32 to vector<8x8xf32>
    %82 = arith.select %71, %80, %81 : vector<8x8xi1>, vector<8x8xf32>
    %cst_28 = arith.constant dense<0xFF800000> : vector<8xf32>
    %83 = vector.multi_reduction <maximumf>, %82, %cst_28 [1] : vector<8x8xf32> to vector<8xf32>
    %84 = vector.shape_cast %83 : vector<8xf32> to vector<8x1xf32>
    %85 = vector.broadcast %84 : vector<8x1xf32> to vector<8x8xf32>
    %86 = arith.subf %82, %85 : vector<8x8xf32>
    %87 = math.exp %86 : vector<8x8xf32>
    %cst_29 = arith.constant dense<0.000000e+00> : vector<8xf32>
    %88 = vector.multi_reduction <add>, %87, %cst_29 [1] : vector<8x8xf32> to vector<8xf32>
    %89 = vector.shape_cast %88 : vector<8xf32> to vector<8x1xf32>
    %90 = tpu.reciprocal %89 {approx = true} : vector<8x1xf32> -> vector<8x1xf32>
    %91 = vector.broadcast %90 : vector<8x1xf32> to vector<8x8xf32>
    %92 = arith.mulf %87, %91 : vector<8x8xf32>
    %93 = arith.truncf %92 : vector<8x8xf32> to vector<8x8xbf16>
    %cst_30 = arith.constant dense<0.000000e+00> : vector<8x16xf32>
    %94 = tpu.matmul %93, %77, %cst_30 {dimension_numbers = #tpu.dot_dimension_numbers<[1], [0], [0], [1], [0, 0, 1, 1], [], []>} : vector<8x8xbf16>, vector<8x16xbf16>, vector<8x16xf32> -> vector<8x16xf32>
    %c0_31 = arith.constant 0 : index
    %c0_32 = arith.constant 0 : index
    %95 = vector.load %arg14[%c0_31, %c0_32] : memref<8x64xf32, #tpu.memory_space<vmem>>, vector<8x16xf32>
    tpu.vector_store %arg14[%c0_31, %c0_32], %94 {strides = array<i32>} : memref<8x64xf32, #tpu.memory_space<vmem>>, vector<8x16xf32>,
    %96 = vector.extract_strided_slice %72 {offsets = [0, 16], sizes = [8, 16], strides = [1, 1]} : vector<8x64xbf16> to vector<8x16xbf16>
    %97 = vector.extract_strided_slice %73 {offsets = [0, 16], sizes = [8, 16], strides = [1, 1]} : vector<8x64xbf16> to vector<8x16xbf16>
    %98 = vector.extract_strided_slice %74 {offsets = [0, 16], sizes = [8, 16], strides = [1, 1]} : vector<8x64xbf16> to vector<8x16xbf16>
    %cst_33 = arith.constant dense<0.000000e+00> : vector<8x8xf32>
    %99 = tpu.matmul %96, %97, %cst_33 {dimension_numbers = #tpu.dot_dimension_numbers<[1], [1], [0], [0], [0, 0, 1, 0], [], []>} : vector<8x16xbf16>, vector<8x16xbf16>, vector<8x8xf32> -> vector<8x8xf32>
    %cst_34 = arith.constant 2.500000e-01 : f32
    %100 = vector.broadcast %cst_34 : f32 to vector<8x8xf32>
    %101 = arith.mulf %99, %100 : vector<8x8xf32>
    %cst_35 = arith.constant -1.000000e+30 : f32
    %102 = vector.broadcast %cst_35 : f32 to vector<8x8xf32>
    %103 = arith.select %71, %101, %102 : vector<8x8xi1>, vector<8x8xf32>
    %cst_36 = arith.constant dense<0xFF800000> : vector<8xf32>
    %104 = vector.multi_reduction <maximumf>, %103, %cst_36 [1] : vector<8x8xf32> to vector<8xf32>
    %105 = vector.shape_cast %104 : vector<8xf32> to vector<8x1xf32>
    %106 = vector.broadcast %105 : vector<8x1xf32> to vector<8x8xf32>
    %107 = arith.subf %103, %106 : vector<8x8xf32>
    %108 = math.exp %107 : vector<8x8xf32>
    %cst_37 = arith.constant dense<0.000000e+00> : vector<8xf32>
    %109 = vector.multi_reduction <add>, %108, %cst_37 [1] : vector<8x8xf32> to vector<8xf32>
    %110 = vector.shape_cast %109 : vector<8xf32> to vector<8x1xf32>
    %111 = tpu.reciprocal %110 {approx = true} : vector<8x1xf32> -> vector<8x1xf32>
    %112 = vector.broadcast %111 : vector<8x1xf32> to vector<8x8xf32>
    %113 = arith.mulf %108, %112 : vector<8x8xf32>
    %114 = arith.truncf %113 : vector<8x8xf32> to vector<8x8xbf16>
    %cst_38 = arith.constant dense<0.000000e+00> : vector<8x16xf32>
    %115 = tpu.matmul %114, %98, %cst_38 {dimension_numbers = #tpu.dot_dimension_numbers<[1], [0], [0], [1], [0, 0, 1, 1], [], []>} : vector<8x8xbf16>, vector<8x16xbf16>, vector<8x16xf32> -> vector<8x16xf32>
    %c0_39 = arith.constant 0 : index
    %c16 = arith.constant 16 : index
    %116 = vector.load %arg14[%c0_39, %c16] : memref<8x64xf32, #tpu.memory_space<vmem>>, vector<8x16xf32>
    tpu.vector_store %arg14[%c0_39, %c16], %115 {strides = array<i32>} : memref<8x64xf32, #tpu.memory_space<vmem>>, vector<8x16xf32>,
    %117 = vector.extract_strided_slice %72 {offsets = [0, 32], sizes = [8, 16], strides = [1, 1]} : vector<8x64xbf16> to vector<8x16xbf16>
    %118 = vector.extract_strided_slice %73 {offsets = [0, 32], sizes = [8, 16], strides = [1, 1]} : vector<8x64xbf16> to vector<8x16xbf16>
    %119 = vector.extract_strided_slice %74 {offsets = [0, 32], sizes = [8, 16], strides = [1, 1]} : vector<8x64xbf16> to vector<8x16xbf16>
    %cst_40 = arith.constant dense<0.000000e+00> : vector<8x8xf32>
    %120 = tpu.matmul %117, %118, %cst_40 {dimension_numbers = #tpu.dot_dimension_numbers<[1], [1], [0], [0], [0, 0, 1, 0], [], []>} : vector<8x16xbf16>, vector<8x16xbf16>, vector<8x8xf32> -> vector<8x8xf32>
    %cst_41 = arith.constant 2.500000e-01 : f32
    %121 = vector.broadcast %cst_41 : f32 to vector<8x8xf32>
    %122 = arith.mulf %120, %121 : vector<8x8xf32>
    %cst_42 = arith.constant -1.000000e+30 : f32
    %123 = vector.broadcast %cst_42 : f32 to vector<8x8xf32>
    %124 = arith.select %71, %122, %123 : vector<8x8xi1>, vector<8x8xf32>
    %cst_43 = arith.constant dense<0xFF800000> : vector<8xf32>
    %125 = vector.multi_reduction <maximumf>, %124, %cst_43 [1] : vector<8x8xf32> to vector<8xf32>
    %126 = vector.shape_cast %125 : vector<8xf32> to vector<8x1xf32>
    %127 = vector.broadcast %126 : vector<8x1xf32> to vector<8x8xf32>
    %128 = arith.subf %124, %127 : vector<8x8xf32>
    %129 = math.exp %128 : vector<8x8xf32>
    %cst_44 = arith.constant dense<0.000000e+00> : vector<8xf32>
    %130 = vector.multi_reduction <add>, %129, %cst_44 [1] : vector<8x8xf32> to vector<8xf32>
    %131 = vector.shape_cast %130 : vector<8xf32> to vector<8x1xf32>
    %132 = tpu.reciprocal %131 {approx = true} : vector<8x1xf32> -> vector<8x1xf32>
    %133 = vector.broadcast %132 : vector<8x1xf32> to vector<8x8xf32>
    %134 = arith.mulf %129, %133 : vector<8x8xf32>
    %135 = arith.truncf %134 : vector<8x8xf32> to vector<8x8xbf16>
    %cst_45 = arith.constant dense<0.000000e+00> : vector<8x16xf32>
    %136 = tpu.matmul %135, %119, %cst_45 {dimension_numbers = #tpu.dot_dimension_numbers<[1], [0], [0], [1], [0, 0, 1, 1], [], []>} : vector<8x8xbf16>, vector<8x16xbf16>, vector<8x16xf32> -> vector<8x16xf32>
    %c0_46 = arith.constant 0 : index
    %c32 = arith.constant 32 : index
    %137 = vector.load %arg14[%c0_46, %c32] : memref<8x64xf32, #tpu.memory_space<vmem>>, vector<8x16xf32>
    tpu.vector_store %arg14[%c0_46, %c32], %136 {strides = array<i32>} : memref<8x64xf32, #tpu.memory_space<vmem>>, vector<8x16xf32>,
    %138 = vector.extract_strided_slice %72 {offsets = [0, 48], sizes = [8, 16], strides = [1, 1]} : vector<8x64xbf16> to vector<8x16xbf16>
    %139 = vector.extract_strided_slice %73 {offsets = [0, 48], sizes = [8, 16], strides = [1, 1]} : vector<8x64xbf16> to vector<8x16xbf16>
    %140 = vector.extract_strided_slice %74 {offsets = [0, 48], sizes = [8, 16], strides = [1, 1]} : vector<8x64xbf16> to vector<8x16xbf16>
    %cst_47 = arith.constant dense<0.000000e+00> : vector<8x8xf32>
    %141 = tpu.matmul %138, %139, %cst_47 {dimension_numbers = #tpu.dot_dimension_numbers<[1], [1], [0], [0], [0, 0, 1, 0], [], []>} : vector<8x16xbf16>, vector<8x16xbf16>, vector<8x8xf32> -> vector<8x8xf32>
    %cst_48 = arith.constant 2.500000e-01 : f32
    %142 = vector.broadcast %cst_48 : f32 to vector<8x8xf32>
    %143 = arith.mulf %141, %142 : vector<8x8xf32>
    %cst_49 = arith.constant -1.000000e+30 : f32
    %144 = vector.broadcast %cst_49 : f32 to vector<8x8xf32>
    %145 = arith.select %71, %143, %144 : vector<8x8xi1>, vector<8x8xf32>
    %cst_50 = arith.constant dense<0xFF800000> : vector<8xf32>
    %146 = vector.multi_reduction <maximumf>, %145, %cst_50 [1] : vector<8x8xf32> to vector<8xf32>
    %147 = vector.shape_cast %146 : vector<8xf32> to vector<8x1xf32>
    %148 = vector.broadcast %147 : vector<8x1xf32> to vector<8x8xf32>
    %149 = arith.subf %145, %148 : vector<8x8xf32>
    %150 = math.exp %149 : vector<8x8xf32>
    %cst_51 = arith.constant dense<0.000000e+00> : vector<8xf32>
    %151 = vector.multi_reduction <add>, %150, %cst_51 [1] : vector<8x8xf32> to vector<8xf32>
    %152 = vector.shape_cast %151 : vector<8xf32> to vector<8x1xf32>
    %153 = tpu.reciprocal %152 {approx = true} : vector<8x1xf32> -> vector<8x1xf32>
    %154 = vector.broadcast %153 : vector<8x1xf32> to vector<8x8xf32>
    %155 = arith.mulf %150, %154 : vector<8x8xf32>
    %156 = arith.truncf %155 : vector<8x8xf32> to vector<8x8xbf16>
    %cst_52 = arith.constant dense<0.000000e+00> : vector<8x16xf32>
    %157 = tpu.matmul %156, %140, %cst_52 {dimension_numbers = #tpu.dot_dimension_numbers<[1], [0], [0], [1], [0, 0, 1, 1], [], []>} : vector<8x8xbf16>, vector<8x16xbf16>, vector<8x16xf32> -> vector<8x16xf32>
    %c0_53 = arith.constant 0 : index
    %c48 = arith.constant 48 : index
    %158 = vector.load %arg14[%c0_53, %c48] : memref<8x64xf32, #tpu.memory_space<vmem>>, vector<8x16xf32>
    tpu.vector_store %arg14[%c0_53, %c48], %157 {strides = array<i32>} : memref<8x64xf32, #tpu.memory_space<vmem>>, vector<8x16xf32>,
    %c0_54 = arith.constant 0 : index
    %c0_55 = arith.constant 0 : index
    %159 = vector.load %arg14[%c0_54, %c0_55] : memref<8x64xf32, #tpu.memory_space<vmem>>, vector<8x64xf32>
    %160 = arith.truncf %159 : vector<8x64xf32> to vector<8x64xbf16>
    %c0_56 = arith.constant 0 : index
    %c0_57 = arith.constant 0 : index
    %161 = vector.load %arg7[%c0_56, %c0_57] : memref<64x64xbf16, #tpu.memory_space<vmem>>, vector<64x64xbf16>
    %cst_58 = arith.constant dense<0.000000e+00> : vector<8x64xf32>
    %162 = tpu.matmul %160, %161, %cst_58 {dimension_numbers = #tpu.dot_dimension_numbers<[1], [0], [0], [1], [0, 0, 1, 1], [], []>} : vector<8x64xbf16>, vector<64x64xbf16>, vector<8x64xf32> -> vector<8x64xf32>
    %c0_59 = arith.constant 0 : index
    %c0_60 = arith.constant 0 : index
    %163 = vector.load %arg8[%c0_59, %c0_60] : memref<1x64xf32, #tpu.memory_space<vmem>>, vector<1x64xf32>
    %164 = vector.broadcast %163 : vector<1x64xf32> to vector<8x64xf32>
    %165 = arith.addf %162, %164 : vector<8x64xf32>
    %c0_61 = arith.constant 0 : index
    %c0_62 = arith.constant 0 : index
    %166 = vector.load %arg9[%c0_61, %c0_62] : memref<64x256xbf16, #tpu.memory_space<vmem>>, vector<64x256xbf16>
    %cst_63 = arith.constant dense<0.000000e+00> : vector<8x256xf32>
    %167 = tpu.matmul %27, %166, %cst_63 {dimension_numbers = #tpu.dot_dimension_numbers<[1], [0], [0], [1], [0, 0, 1, 1], [], []>} : vector<8x64xbf16>, vector<64x256xbf16>, vector<8x256xf32> -> vector<8x256xf32>
    %c0_64 = arith.constant 0 : index
    %c0_65 = arith.constant 0 : index
    %168 = vector.load %arg10[%c0_64, %c0_65] : memref<1x256xf32, #tpu.memory_space<vmem>>, vector<1x256xf32>
    %169 = vector.broadcast %168 : vector<1x256xf32> to vector<8x256xf32>
    %170 = arith.addf %167, %169 : vector<8x256xf32>
    %cst_66 = arith.constant 5.000000e-01 : f32
    %171 = vector.broadcast %cst_66 : f32 to vector<8x256xf32>
    %172 = arith.mulf %171, %170 : vector<8x256xf32>
    %cst_67 = arith.constant 0.707106769 : f32
    %173 = vector.broadcast %cst_67 : f32 to vector<8x256xf32>
    %174 = arith.mulf %170, %173 : vector<8x256xf32>
    %175 = math.absf %174 : vector<8x256xf32>
    %cst_68 = arith.constant 0.327591091 : f32
    %176 = vector.broadcast %cst_68 : f32 to vector<8x256xf32>
    %177 = arith.mulf %176, %175 : vector<8x256xf32>
    %cst_69 = arith.constant 1.000000e+00 : f32
    %178 = vector.broadcast %cst_69 : f32 to vector<8x256xf32>
    %179 = arith.addf %178, %177 : vector<8x256xf32>
    %cst_70 = arith.constant 1.000000e+00 : f32
    %180 = vector.broadcast %cst_70 : f32 to vector<8x256xf32>
    %181 = arith.divf %180, %179 : vector<8x256xf32>
    %cst_71 = arith.constant 1.06140542 : f32
    %182 = vector.broadcast %cst_71 : f32 to vector<8x256xf32>
    %183 = arith.mulf %182, %181 : vector<8x256xf32>
    %cst_72 = arith.constant -1.45315206 : f32
    %184 = vector.broadcast %cst_72 : f32 to vector<8x256xf32>
    %185 = arith.addf %183, %184 : vector<8x256xf32>
    %186 = arith.mulf %185, %181 : vector<8x256xf32>
    %cst_73 = arith.constant 1.42141378 : f32
    %187 = vector.broadcast %cst_73 : f32 to vector<8x256xf32>
    %188 = arith.addf %186, %187 : vector<8x256xf32>
    %189 = arith.mulf %188, %181 : vector<8x256xf32>
    %cst_74 = arith.constant -0.284496725 : f32
    %190 = vector.broadcast %cst_74 : f32 to vector<8x256xf32>
    %191 = arith.addf %189, %190 : vector<8x256xf32>
    %192 = arith.mulf %191, %181 : vector<8x256xf32>
    %cst_75 = arith.constant 0.254829586 : f32
    %193 = vector.broadcast %cst_75 : f32 to vector<8x256xf32>
    %194 = arith.addf %192, %193 : vector<8x256xf32>
    %195 = arith.mulf %194, %181 : vector<8x256xf32>
    %cst_76 = arith.constant 0.000000e+00 : f32
    %196 = vector.broadcast %cst_76 : f32 to vector<8x256xf32>
    %197 = arith.subf %196, %175 : vector<8x256xf32>
    %198 = arith.mulf %197, %175 : vector<8x256xf32>
    %199 = math.exp %198 : vector<8x256xf32>
    %200 = arith.mulf %195, %199 : vector<8x256xf32>
    %cst_77 = arith.constant 1.000000e+00 : f32
    %201 = vector.broadcast %cst_77 : f32 to vector<8x256xf32>
    %202 = arith.subf %201, %200 : vector<8x256xf32>
    %cst_78 = arith.constant 0.000000e+00 : f32
    %203 = vector.broadcast %cst_78 : f32 to vector<8x256xf32>
    %204 = arith.cmpf oge, %174, %203 : vector<8x256xf32>
    %cst_79 = arith.constant 0.000000e+00 : f32
    %205 = vector.broadcast %cst_79 : f32 to vector<8x256xf32>
    %206 = arith.subf %205, %202 : vector<8x256xf32>
    %207 = arith.select %204, %202, %206 : vector<8x256xi1>, vector<8x256xf32>
    %cst_80 = arith.constant 1.000000e+00 : f32
    %208 = vector.broadcast %cst_80 : f32 to vector<8x256xf32>
    %209 = arith.addf %208, %207 : vector<8x256xf32>
    %210 = arith.mulf %172, %209 : vector<8x256xf32>
    %211 = arith.truncf %210 : vector<8x256xf32> to vector<8x256xbf16>
    %c0_81 = arith.constant 0 : index
    %c0_82 = arith.constant 0 : index
    %212 = vector.load %arg11[%c0_81, %c0_82] : memref<256x64xbf16, #tpu.memory_space<vmem>>, vector<256x64xbf16>
    %cst_83 = arith.constant dense<0.000000e+00> : vector<8x64xf32>
    %213 = tpu.matmul %211, %212, %cst_83 {dimension_numbers = #tpu.dot_dimension_numbers<[1], [0], [0], [1], [0, 0, 1, 1], [], []>} : vector<8x256xbf16>, vector<256x64xbf16>, vector<8x64xf32> -> vector<8x64xf32>
    %c0_84 = arith.constant 0 : index
    %c0_85 = arith.constant 0 : index
    %214 = vector.load %arg12[%c0_84, %c0_85] : memref<1x64xf32, #tpu.memory_space<vmem>>, vector<1x64xf32>
    %215 = vector.broadcast %214 : vector<1x64xf32> to vector<8x64xf32>
    %216 = arith.addf %213, %215 : vector<8x64xf32>
    %217 = arith.addf %165, %216 : vector<8x64xf32>
    %218 = tpu.concatenate %217, %4 in 1 : vector<8x64xf32>, vector<8x64xf32> -> vector<8x128xf32>
    %219 = arith.truncf %218 : vector<8x128xf32> to vector<8x128xbf16>
    %c0_86 = arith.constant 0 : index
    %c0_87 = arith.constant 0 : index
    %220 = vector.load %arg13[%c0_86, %c0_87] : memref<8x128xbf16, #tpu.memory_space<vmem>>, vector<8x128xbf16>
    tpu.vector_store %arg13[%c0_86, %c0_87], %219 {strides = array<i32>} : memref<8x128xbf16, #tpu.memory_space<vmem>>, vector<8x128xbf16>,
    return
  }
}

module attributes {stable_mosaic.version = 11 : i64} {
  func.func @_final_kernel(%arg0: memref<1x128xbf16, #tpu.memory_space<vmem>>, %arg1: memref<1x64xf32, #tpu.memory_space<vmem>>, %arg2: memref<1x64xf32, #tpu.memory_space<vmem>>, %arg3: memref<64x128xbf16, #tpu.memory_space<vmem>>, %arg4: memref<1x128xf32, #tpu.memory_space<vmem>>, %arg5: memref<1x128xf32, #tpu.memory_space<vmem>>) attributes {dimension_semantics = [], scalar_prefetch = 0 : i64, scratch_operands = 0 : i64, tpu.core_type = #tpu.core_type<tc>} {
    %c0 = arith.constant 0 : index
    %c0_0 = arith.constant 0 : index
    %0 = vector.load %arg0[%c0, %c0_0] : memref<1x128xbf16, #tpu.memory_space<vmem>>, vector<1x128xbf16>
    %1 = arith.extf %0 : vector<1x128xbf16> to vector<1x128xf32>
    %2 = vector.extract_strided_slice %1 {offsets = [0, 0], sizes = [1, 64], strides = [1, 1]} : vector<1x128xf32> to vector<1x64xf32>
    %3 = vector.extract_strided_slice %1 {offsets = [0, 64], sizes = [1, 64], strides = [1, 1]} : vector<1x128xf32> to vector<1x64xf32>
    %4 = arith.addf %2, %3 : vector<1x64xf32>
    %cst = arith.constant dense<0.000000e+00> : vector<1xf32>
    %5 = vector.multi_reduction <add>, %4, %cst [1] : vector<1x64xf32> to vector<1xf32>
    %6 = vector.shape_cast %5 : vector<1xf32> to vector<1x1xf32>
    %cst_1 = arith.constant 6.400000e+01 : f32
    %7 = vector.broadcast %cst_1 : f32 to vector<1x1xf32>
    %8 = arith.divf %6, %7 : vector<1x1xf32>
    %9 = vector.broadcast %8 : vector<1x1xf32> to vector<1x64xf32>
    %10 = arith.subf %4, %9 : vector<1x64xf32>
    %11 = arith.mulf %10, %10 : vector<1x64xf32>
    %cst_2 = arith.constant dense<0.000000e+00> : vector<1xf32>
    %12 = vector.multi_reduction <add>, %11, %cst_2 [1] : vector<1x64xf32> to vector<1xf32>
    %13 = vector.shape_cast %12 : vector<1xf32> to vector<1x1xf32>
    %cst_3 = arith.constant 6.400000e+01 : f32
    %14 = vector.broadcast %cst_3 : f32 to vector<1x1xf32>
    %15 = arith.divf %13, %14 : vector<1x1xf32>
    %cst_4 = arith.constant 9.99999974E-6 : f32
    %16 = vector.broadcast %cst_4 : f32 to vector<1x1xf32>
    %17 = arith.addf %15, %16 : vector<1x1xf32>
    %18 = math.rsqrt %17 : vector<1x1xf32>
    %19 = vector.broadcast %18 : vector<1x1xf32> to vector<1x64xf32>
    %20 = arith.mulf %10, %19 : vector<1x64xf32>
    %c0_5 = arith.constant 0 : index
    %c0_6 = arith.constant 0 : index
    %21 = vector.load %arg1[%c0_5, %c0_6] : memref<1x64xf32, #tpu.memory_space<vmem>>, vector<1x64xf32>
    %22 = arith.mulf %20, %21 : vector<1x64xf32>
    %c0_7 = arith.constant 0 : index
    %c0_8 = arith.constant 0 : index
    %23 = vector.load %arg2[%c0_7, %c0_8] : memref<1x64xf32, #tpu.memory_space<vmem>>, vector<1x64xf32>
    %24 = arith.addf %22, %23 : vector<1x64xf32>
    %25 = arith.truncf %24 : vector<1x64xf32> to vector<1x64xbf16>
    %c0_9 = arith.constant 0 : index
    %c0_10 = arith.constant 0 : index
    %26 = vector.load %arg3[%c0_9, %c0_10] : memref<64x128xbf16, #tpu.memory_space<vmem>>, vector<64x128xbf16>
    %cst_11 = arith.constant dense<0.000000e+00> : vector<1x128xf32>
    %27 = tpu.matmul %25, %26, %cst_11 {dimension_numbers = #tpu.dot_dimension_numbers<[1], [0], [0], [1], [0, 0, 1, 1], [], []>} : vector<1x64xbf16>, vector<64x128xbf16>, vector<1x128xf32> -> vector<1x128xf32>
    %c0_12 = arith.constant 0 : index
    %c0_13 = arith.constant 0 : index
    %28 = vector.load %arg4[%c0_12, %c0_13] : memref<1x128xf32, #tpu.memory_space<vmem>>, vector<1x128xf32>
    %29 = arith.addf %27, %28 : vector<1x128xf32>
    %c0_14 = arith.constant 0 : index
    %c0_15 = arith.constant 0 : index
    %30 = vector.load %arg5[%c0_14, %c0_15] : memref<1x128xf32, #tpu.memory_space<vmem>>, vector<1x128xf32>
    tpu.vector_store %arg5[%c0_14, %c0_15], %29 {strides = array<i32>} : memref<1x128xf32, #tpu.memory_space<vmem>>, vector<1x128xf32>,
    return
  }
}

module attributes {stable_mosaic.version = 11 : i64} {
  func.func @_phi_layer_kernel(%arg0: memref<8x64xbf16, #tpu.memory_space<vmem>>, %arg1: memref<8x16xf32, #tpu.memory_space<vmem>>, %arg2: memref<8x16xf32, #tpu.memory_space<vmem>>, %arg3: memref<1x64xf32, #tpu.memory_space<vmem>>, %arg4: memref<1x64xf32, #tpu.memory_space<vmem>>, %arg5: memref<64x192xbf16, #tpu.memory_space<vmem>>, %arg6: memref<1x192xf32, #tpu.memory_space<vmem>>, %arg7: memref<64x64xbf16, #tpu.memory_space<vmem>>, %arg8: memref<1x64xf32, #tpu.memory_space<vmem>>, %arg9: memref<64x256xbf16, #tpu.memory_space<vmem>>, %arg10: memref<1x256xf32, #tpu.memory_space<vmem>>, %arg11: memref<256x64xbf16, #tpu.memory_space<vmem>>, %arg12: memref<1x64xf32, #tpu.memory_space<vmem>>, %arg13: memref<8x128xbf16, #tpu.memory_space<vmem>>, %arg14: memref<8x64xf32, #tpu.memory_space<vmem>>) attributes {dimension_semantics = [], scalar_prefetch = 0 : i64, scratch_operands = 1 : i64, tpu.core_type = #tpu.core_type<tc>} {
    %c0 = arith.constant 0 : index
    %c0_0 = arith.constant 0 : index
    %0 = vector.load %arg0[%c0, %c0_0] : memref<8x64xbf16, #tpu.memory_space<vmem>>, vector<8x64xbf16>
    %1 = arith.extf %0 : vector<8x64xbf16> to vector<8x64xf32>
    %cst = arith.constant dense<0.000000e+00> : vector<8xf32>
    %2 = vector.multi_reduction <add>, %1, %cst [1] : vector<8x64xf32> to vector<8xf32>
    %3 = vector.shape_cast %2 : vector<8xf32> to vector<8x1xf32>
    %cst_1 = arith.constant 6.400000e+01 : f32
    %4 = vector.broadcast %cst_1 : f32 to vector<8x1xf32>
    %5 = arith.divf %3, %4 : vector<8x1xf32>
    %6 = vector.broadcast %5 : vector<8x1xf32> to vector<8x64xf32>
    %7 = arith.subf %1, %6 : vector<8x64xf32>
    %8 = arith.mulf %7, %7 : vector<8x64xf32>
    %cst_2 = arith.constant dense<0.000000e+00> : vector<8xf32>
    %9 = vector.multi_reduction <add>, %8, %cst_2 [1] : vector<8x64xf32> to vector<8xf32>
    %10 = vector.shape_cast %9 : vector<8xf32> to vector<8x1xf32>
    %cst_3 = arith.constant 6.400000e+01 : f32
    %11 = vector.broadcast %cst_3 : f32 to vector<8x1xf32>
    %12 = arith.divf %10, %11 : vector<8x1xf32>
    %cst_4 = arith.constant 9.99999974E-6 : f32
    %13 = vector.broadcast %cst_4 : f32 to vector<8x1xf32>
    %14 = arith.addf %12, %13 : vector<8x1xf32>
    %15 = math.rsqrt %14 : vector<8x1xf32>
    %16 = vector.broadcast %15 : vector<8x1xf32> to vector<8x64xf32>
    %17 = arith.mulf %7, %16 : vector<8x64xf32>
    %c0_5 = arith.constant 0 : index
    %c0_6 = arith.constant 0 : index
    %18 = vector.load %arg3[%c0_5, %c0_6] : memref<1x64xf32, #tpu.memory_space<vmem>>, vector<1x64xf32>
    %19 = vector.broadcast %18 : vector<1x64xf32> to vector<8x64xf32>
    %20 = arith.mulf %17, %19 : vector<8x64xf32>
    %c0_7 = arith.constant 0 : index
    %c0_8 = arith.constant 0 : index
    %21 = vector.load %arg4[%c0_7, %c0_8] : memref<1x64xf32, #tpu.memory_space<vmem>>, vector<1x64xf32>
    %22 = vector.broadcast %21 : vector<1x64xf32> to vector<8x64xf32>
    %23 = arith.addf %20, %22 : vector<8x64xf32>
    %24 = arith.truncf %23 : vector<8x64xf32> to vector<8x64xbf16>
    %c0_9 = arith.constant 0 : index
    %c0_10 = arith.constant 0 : index
    %25 = vector.load %arg5[%c0_9, %c0_10] : memref<64x192xbf16, #tpu.memory_space<vmem>>, vector<64x192xbf16>
    %cst_11 = arith.constant dense<0.000000e+00> : vector<8x192xf32>
    %26 = tpu.matmul %24, %25, %cst_11 {dimension_numbers = #tpu.dot_dimension_numbers<[1], [0], [0], [1], [0, 0, 1, 1], [], []>} : vector<8x64xbf16>, vector<64x192xbf16>, vector<8x192xf32> -> vector<8x192xf32>
    %c0_12 = arith.constant 0 : index
    %c0_13 = arith.constant 0 : index
    %27 = vector.load %arg6[%c0_12, %c0_13] : memref<1x192xf32, #tpu.memory_space<vmem>>, vector<1x192xf32>
    %28 = vector.broadcast %27 : vector<1x192xf32> to vector<8x192xf32>
    %29 = arith.addf %26, %28 : vector<8x192xf32>
    %30 = vector.extract_strided_slice %29 {offsets = [0, 0], sizes = [8, 64], strides = [1, 1]} : vector<8x192xf32> to vector<8x64xf32>
    %31 = vector.extract_strided_slice %29 {offsets = [0, 64], sizes = [8, 64], strides = [1, 1]} : vector<8x192xf32> to vector<8x64xf32>
    %32 = vector.extract_strided_slice %29 {offsets = [0, 128], sizes = [8, 64], strides = [1, 1]} : vector<8x192xf32> to vector<8x64xf32>
    %c0_14 = arith.constant 0 : index
    %c0_15 = arith.constant 0 : index
    %33 = vector.load %arg1[%c0_14, %c0_15] : memref<8x16xf32, #tpu.memory_space<vmem>>, vector<8x16xf32>
    %c0_16 = arith.constant 0 : index
    %c0_17 = arith.constant 0 : index
    %34 = vector.load %arg2[%c0_16, %c0_17] : memref<8x16xf32, #tpu.memory_space<vmem>>, vector<8x16xf32>
    %35 = tpu.iota {dimensions = array<i32: 1>} : vector<8x16xi32>
    %c4_i32 = arith.constant 4 : i32
    %36 = vector.broadcast %c4_i32 : i32 to vector<8x16xi32>
    %37 = arith.cmpi slt, %35, %36 : vector<8x16xi32>
    %cst_18 = arith.constant 0.000000e+00 : f32
    %38 = vector.broadcast %cst_18 : f32 to vector<8x16xf32>
    %39 = arith.subf %38, %34 : vector<8x16xf32>
    %cst_19 = arith.constant 0.000000e+00 : f32
    %40 = vector.broadcast %cst_19 : f32 to vector<8x16xf32>
    %41 = arith.select %37, %39, %40 : vector<8x16xi1>, vector<8x16xf32>
    %c4_i32_20 = arith.constant 4 : i32
    %42 = vector.broadcast %c4_i32_20 : i32 to vector<8x16xi32>
    %43 = arith.cmpi sge, %35, %42 : vector<8x16xi32>
    %c8_i32 = arith.constant 8 : i32
    %44 = vector.broadcast %c8_i32 : i32 to vector<8x16xi32>
    %45 = arith.cmpi slt, %35, %44 : vector<8x16xi32>
    %46 = arith.andi %43, %45 : vector<8x16xi1>
    %cst_21 = arith.constant 0.000000e+00 : f32
    %47 = vector.broadcast %cst_21 : f32 to vector<8x16xf32>
    %48 = arith.select %46, %34, %47 : vector<8x16xi1>, vector<8x16xf32>
    %49 = tpu.concatenate %33, %33, %33, %33 in 1 : vector<8x16xf32>, vector<8x16xf32>, vector<8x16xf32>, vector<8x16xf32> -> vector<8x64xf32>
    %50 = tpu.concatenate %41, %41, %41, %41 in 1 : vector<8x16xf32>, vector<8x16xf32>, vector<8x16xf32>, vector<8x16xf32> -> vector<8x64xf32>
    %51 = tpu.concatenate %48, %48, %48, %48 in 1 : vector<8x16xf32>, vector<8x16xf32>, vector<8x16xf32>, vector<8x16xf32> -> vector<8x64xf32>
    %c60_i32 = arith.constant 60 : i32
    %52 = tpu.dynamic_rotate %30 by %c60_i32 dim 1 : vector<8x64xf32>, i32 -> vector<8x64xf32>
    %c4_i32_22 = arith.constant 4 : i32
    %53 = tpu.dynamic_rotate %30 by %c4_i32_22 dim 1 : vector<8x64xf32>, i32 -> vector<8x64xf32>
    %54 = arith.mulf %30, %49 : vector<8x64xf32>
    %55 = arith.mulf %52, %50 : vector<8x64xf32>
    %56 = arith.addf %54, %55 : vector<8x64xf32>
    %57 = arith.mulf %53, %51 : vector<8x64xf32>
    %58 = arith.addf %56, %57 : vector<8x64xf32>
    %c60_i32_23 = arith.constant 60 : i32
    %59 = tpu.dynamic_rotate %31 by %c60_i32_23 dim 1 : vector<8x64xf32>, i32 -> vector<8x64xf32>
    %c4_i32_24 = arith.constant 4 : i32
    %60 = tpu.dynamic_rotate %31 by %c4_i32_24 dim 1 : vector<8x64xf32>, i32 -> vector<8x64xf32>
    %61 = arith.mulf %31, %49 : vector<8x64xf32>
    %62 = arith.mulf %59, %50 : vector<8x64xf32>
    %63 = arith.addf %61, %62 : vector<8x64xf32>
    %64 = arith.mulf %60, %51 : vector<8x64xf32>
    %65 = arith.addf %63, %64 : vector<8x64xf32>
    %66 = tpu.iota {dimensions = array<i32: 0>} : vector<8x8xi32>
    %67 = tpu.iota {dimensions = array<i32: 1>} : vector<8x8xi32>
    %68 = arith.cmpi sle, %67, %66 : vector<8x8xi32>
    %69 = arith.truncf %58 : vector<8x64xf32> to vector<8x64xbf16>
    %70 = arith.truncf %65 : vector<8x64xf32> to vector<8x64xbf16>
    %71 = arith.truncf %32 : vector<8x64xf32> to vector<8x64xbf16>
    %72 = vector.extract_strided_slice %69 {offsets = [0, 0], sizes = [8, 16], strides = [1, 1]} : vector<8x64xbf16> to vector<8x16xbf16>
    %73 = vector.extract_strided_slice %70 {offsets = [0, 0], sizes = [8, 16], strides = [1, 1]} : vector<8x64xbf16> to vector<8x16xbf16>
    %74 = vector.extract_strided_slice %71 {offsets = [0, 0], sizes = [8, 16], strides = [1, 1]} : vector<8x64xbf16> to vector<8x16xbf16>
    %cst_25 = arith.constant dense<0.000000e+00> : vector<8x8xf32>
    %75 = tpu.matmul %72, %73, %cst_25 {dimension_numbers = #tpu.dot_dimension_numbers<[1], [1], [0], [0], [0, 0, 1, 0], [], []>} : vector<8x16xbf16>, vector<8x16xbf16>, vector<8x8xf32> -> vector<8x8xf32>
    %cst_26 = arith.constant 2.500000e-01 : f32
    %76 = vector.broadcast %cst_26 : f32 to vector<8x8xf32>
    %77 = arith.mulf %75, %76 : vector<8x8xf32>
    %cst_27 = arith.constant -1.000000e+30 : f32
    %78 = vector.broadcast %cst_27 : f32 to vector<8x8xf32>
    %79 = arith.select %68, %77, %78 : vector<8x8xi1>, vector<8x8xf32>
    %cst_28 = arith.constant dense<0xFF800000> : vector<8xf32>
    %80 = vector.multi_reduction <maximumf>, %79, %cst_28 [1] : vector<8x8xf32> to vector<8xf32>
    %81 = vector.shape_cast %80 : vector<8xf32> to vector<8x1xf32>
    %82 = vector.broadcast %81 : vector<8x1xf32> to vector<8x8xf32>
    %83 = arith.subf %79, %82 : vector<8x8xf32>
    %84 = math.exp %83 : vector<8x8xf32>
    %cst_29 = arith.constant dense<0.000000e+00> : vector<8xf32>
    %85 = vector.multi_reduction <add>, %84, %cst_29 [1] : vector<8x8xf32> to vector<8xf32>
    %86 = vector.shape_cast %85 : vector<8xf32> to vector<8x1xf32>
    %87 = tpu.reciprocal %86 {approx = true} : vector<8x1xf32> -> vector<8x1xf32>
    %88 = vector.broadcast %87 : vector<8x1xf32> to vector<8x8xf32>
    %89 = arith.mulf %84, %88 : vector<8x8xf32>
    %90 = arith.truncf %89 : vector<8x8xf32> to vector<8x8xbf16>
    %cst_30 = arith.constant dense<0.000000e+00> : vector<8x16xf32>
    %91 = tpu.matmul %90, %74, %cst_30 {dimension_numbers = #tpu.dot_dimension_numbers<[1], [0], [0], [1], [0, 0, 1, 1], [], []>} : vector<8x8xbf16>, vector<8x16xbf16>, vector<8x16xf32> -> vector<8x16xf32>
    %c0_31 = arith.constant 0 : index
    %c0_32 = arith.constant 0 : index
    %92 = vector.load %arg14[%c0_31, %c0_32] : memref<8x64xf32, #tpu.memory_space<vmem>>, vector<8x16xf32>
    tpu.vector_store %arg14[%c0_31, %c0_32], %91 {strides = array<i32>} : memref<8x64xf32, #tpu.memory_space<vmem>>, vector<8x16xf32>,
    %93 = vector.extract_strided_slice %69 {offsets = [0, 16], sizes = [8, 16], strides = [1, 1]} : vector<8x64xbf16> to vector<8x16xbf16>
    %94 = vector.extract_strided_slice %70 {offsets = [0, 16], sizes = [8, 16], strides = [1, 1]} : vector<8x64xbf16> to vector<8x16xbf16>
    %95 = vector.extract_strided_slice %71 {offsets = [0, 16], sizes = [8, 16], strides = [1, 1]} : vector<8x64xbf16> to vector<8x16xbf16>
    %cst_33 = arith.constant dense<0.000000e+00> : vector<8x8xf32>
    %96 = tpu.matmul %93, %94, %cst_33 {dimension_numbers = #tpu.dot_dimension_numbers<[1], [1], [0], [0], [0, 0, 1, 0], [], []>} : vector<8x16xbf16>, vector<8x16xbf16>, vector<8x8xf32> -> vector<8x8xf32>
    %cst_34 = arith.constant 2.500000e-01 : f32
    %97 = vector.broadcast %cst_34 : f32 to vector<8x8xf32>
    %98 = arith.mulf %96, %97 : vector<8x8xf32>
    %cst_35 = arith.constant -1.000000e+30 : f32
    %99 = vector.broadcast %cst_35 : f32 to vector<8x8xf32>
    %100 = arith.select %68, %98, %99 : vector<8x8xi1>, vector<8x8xf32>
    %cst_36 = arith.constant dense<0xFF800000> : vector<8xf32>
    %101 = vector.multi_reduction <maximumf>, %100, %cst_36 [1] : vector<8x8xf32> to vector<8xf32>
    %102 = vector.shape_cast %101 : vector<8xf32> to vector<8x1xf32>
    %103 = vector.broadcast %102 : vector<8x1xf32> to vector<8x8xf32>
    %104 = arith.subf %100, %103 : vector<8x8xf32>
    %105 = math.exp %104 : vector<8x8xf32>
    %cst_37 = arith.constant dense<0.000000e+00> : vector<8xf32>
    %106 = vector.multi_reduction <add>, %105, %cst_37 [1] : vector<8x8xf32> to vector<8xf32>
    %107 = vector.shape_cast %106 : vector<8xf32> to vector<8x1xf32>
    %108 = tpu.reciprocal %107 {approx = true} : vector<8x1xf32> -> vector<8x1xf32>
    %109 = vector.broadcast %108 : vector<8x1xf32> to vector<8x8xf32>
    %110 = arith.mulf %105, %109 : vector<8x8xf32>
    %111 = arith.truncf %110 : vector<8x8xf32> to vector<8x8xbf16>
    %cst_38 = arith.constant dense<0.000000e+00> : vector<8x16xf32>
    %112 = tpu.matmul %111, %95, %cst_38 {dimension_numbers = #tpu.dot_dimension_numbers<[1], [0], [0], [1], [0, 0, 1, 1], [], []>} : vector<8x8xbf16>, vector<8x16xbf16>, vector<8x16xf32> -> vector<8x16xf32>
    %c0_39 = arith.constant 0 : index
    %c16 = arith.constant 16 : index
    %113 = vector.load %arg14[%c0_39, %c16] : memref<8x64xf32, #tpu.memory_space<vmem>>, vector<8x16xf32>
    tpu.vector_store %arg14[%c0_39, %c16], %112 {strides = array<i32>} : memref<8x64xf32, #tpu.memory_space<vmem>>, vector<8x16xf32>,
    %114 = vector.extract_strided_slice %69 {offsets = [0, 32], sizes = [8, 16], strides = [1, 1]} : vector<8x64xbf16> to vector<8x16xbf16>
    %115 = vector.extract_strided_slice %70 {offsets = [0, 32], sizes = [8, 16], strides = [1, 1]} : vector<8x64xbf16> to vector<8x16xbf16>
    %116 = vector.extract_strided_slice %71 {offsets = [0, 32], sizes = [8, 16], strides = [1, 1]} : vector<8x64xbf16> to vector<8x16xbf16>
    %cst_40 = arith.constant dense<0.000000e+00> : vector<8x8xf32>
    %117 = tpu.matmul %114, %115, %cst_40 {dimension_numbers = #tpu.dot_dimension_numbers<[1], [1], [0], [0], [0, 0, 1, 0], [], []>} : vector<8x16xbf16>, vector<8x16xbf16>, vector<8x8xf32> -> vector<8x8xf32>
    %cst_41 = arith.constant 2.500000e-01 : f32
    %118 = vector.broadcast %cst_41 : f32 to vector<8x8xf32>
    %119 = arith.mulf %117, %118 : vector<8x8xf32>
    %cst_42 = arith.constant -1.000000e+30 : f32
    %120 = vector.broadcast %cst_42 : f32 to vector<8x8xf32>
    %121 = arith.select %68, %119, %120 : vector<8x8xi1>, vector<8x8xf32>
    %cst_43 = arith.constant dense<0xFF800000> : vector<8xf32>
    %122 = vector.multi_reduction <maximumf>, %121, %cst_43 [1] : vector<8x8xf32> to vector<8xf32>
    %123 = vector.shape_cast %122 : vector<8xf32> to vector<8x1xf32>
    %124 = vector.broadcast %123 : vector<8x1xf32> to vector<8x8xf32>
    %125 = arith.subf %121, %124 : vector<8x8xf32>
    %126 = math.exp %125 : vector<8x8xf32>
    %cst_44 = arith.constant dense<0.000000e+00> : vector<8xf32>
    %127 = vector.multi_reduction <add>, %126, %cst_44 [1] : vector<8x8xf32> to vector<8xf32>
    %128 = vector.shape_cast %127 : vector<8xf32> to vector<8x1xf32>
    %129 = tpu.reciprocal %128 {approx = true} : vector<8x1xf32> -> vector<8x1xf32>
    %130 = vector.broadcast %129 : vector<8x1xf32> to vector<8x8xf32>
    %131 = arith.mulf %126, %130 : vector<8x8xf32>
    %132 = arith.truncf %131 : vector<8x8xf32> to vector<8x8xbf16>
    %cst_45 = arith.constant dense<0.000000e+00> : vector<8x16xf32>
    %133 = tpu.matmul %132, %116, %cst_45 {dimension_numbers = #tpu.dot_dimension_numbers<[1], [0], [0], [1], [0, 0, 1, 1], [], []>} : vector<8x8xbf16>, vector<8x16xbf16>, vector<8x16xf32> -> vector<8x16xf32>
    %c0_46 = arith.constant 0 : index
    %c32 = arith.constant 32 : index
    %134 = vector.load %arg14[%c0_46, %c32] : memref<8x64xf32, #tpu.memory_space<vmem>>, vector<8x16xf32>
    tpu.vector_store %arg14[%c0_46, %c32], %133 {strides = array<i32>} : memref<8x64xf32, #tpu.memory_space<vmem>>, vector<8x16xf32>,
    %135 = vector.extract_strided_slice %69 {offsets = [0, 48], sizes = [8, 16], strides = [1, 1]} : vector<8x64xbf16> to vector<8x16xbf16>
    %136 = vector.extract_strided_slice %70 {offsets = [0, 48], sizes = [8, 16], strides = [1, 1]} : vector<8x64xbf16> to vector<8x16xbf16>
    %137 = vector.extract_strided_slice %71 {offsets = [0, 48], sizes = [8, 16], strides = [1, 1]} : vector<8x64xbf16> to vector<8x16xbf16>
    %cst_47 = arith.constant dense<0.000000e+00> : vector<8x8xf32>
    %138 = tpu.matmul %135, %136, %cst_47 {dimension_numbers = #tpu.dot_dimension_numbers<[1], [1], [0], [0], [0, 0, 1, 0], [], []>} : vector<8x16xbf16>, vector<8x16xbf16>, vector<8x8xf32> -> vector<8x8xf32>
    %cst_48 = arith.constant 2.500000e-01 : f32
    %139 = vector.broadcast %cst_48 : f32 to vector<8x8xf32>
    %140 = arith.mulf %138, %139 : vector<8x8xf32>
    %cst_49 = arith.constant -1.000000e+30 : f32
    %141 = vector.broadcast %cst_49 : f32 to vector<8x8xf32>
    %142 = arith.select %68, %140, %141 : vector<8x8xi1>, vector<8x8xf32>
    %cst_50 = arith.constant dense<0xFF800000> : vector<8xf32>
    %143 = vector.multi_reduction <maximumf>, %142, %cst_50 [1] : vector<8x8xf32> to vector<8xf32>
    %144 = vector.shape_cast %143 : vector<8xf32> to vector<8x1xf32>
    %145 = vector.broadcast %144 : vector<8x1xf32> to vector<8x8xf32>
    %146 = arith.subf %142, %145 : vector<8x8xf32>
    %147 = math.exp %146 : vector<8x8xf32>
    %cst_51 = arith.constant dense<0.000000e+00> : vector<8xf32>
    %148 = vector.multi_reduction <add>, %147, %cst_51 [1] : vector<8x8xf32> to vector<8xf32>
    %149 = vector.shape_cast %148 : vector<8xf32> to vector<8x1xf32>
    %150 = tpu.reciprocal %149 {approx = true} : vector<8x1xf32> -> vector<8x1xf32>
    %151 = vector.broadcast %150 : vector<8x1xf32> to vector<8x8xf32>
    %152 = arith.mulf %147, %151 : vector<8x8xf32>
    %153 = arith.truncf %152 : vector<8x8xf32> to vector<8x8xbf16>
    %cst_52 = arith.constant dense<0.000000e+00> : vector<8x16xf32>
    %154 = tpu.matmul %153, %137, %cst_52 {dimension_numbers = #tpu.dot_dimension_numbers<[1], [0], [0], [1], [0, 0, 1, 1], [], []>} : vector<8x8xbf16>, vector<8x16xbf16>, vector<8x16xf32> -> vector<8x16xf32>
    %c0_53 = arith.constant 0 : index
    %c48 = arith.constant 48 : index
    %155 = vector.load %arg14[%c0_53, %c48] : memref<8x64xf32, #tpu.memory_space<vmem>>, vector<8x16xf32>
    tpu.vector_store %arg14[%c0_53, %c48], %154 {strides = array<i32>} : memref<8x64xf32, #tpu.memory_space<vmem>>, vector<8x16xf32>,
    %c0_54 = arith.constant 0 : index
    %c0_55 = arith.constant 0 : index
    %156 = vector.load %arg14[%c0_54, %c0_55] : memref<8x64xf32, #tpu.memory_space<vmem>>, vector<8x64xf32>
    %157 = arith.truncf %156 : vector<8x64xf32> to vector<8x64xbf16>
    %c0_56 = arith.constant 0 : index
    %c0_57 = arith.constant 0 : index
    %158 = vector.load %arg7[%c0_56, %c0_57] : memref<64x64xbf16, #tpu.memory_space<vmem>>, vector<64x64xbf16>
    %cst_58 = arith.constant dense<0.000000e+00> : vector<8x64xf32>
    %159 = tpu.matmul %157, %158, %cst_58 {dimension_numbers = #tpu.dot_dimension_numbers<[1], [0], [0], [1], [0, 0, 1, 1], [], []>} : vector<8x64xbf16>, vector<64x64xbf16>, vector<8x64xf32> -> vector<8x64xf32>
    %c0_59 = arith.constant 0 : index
    %c0_60 = arith.constant 0 : index
    %160 = vector.load %arg8[%c0_59, %c0_60] : memref<1x64xf32, #tpu.memory_space<vmem>>, vector<1x64xf32>
    %161 = vector.broadcast %160 : vector<1x64xf32> to vector<8x64xf32>
    %162 = arith.addf %159, %161 : vector<8x64xf32>
    %c0_61 = arith.constant 0 : index
    %c0_62 = arith.constant 0 : index
    %163 = vector.load %arg9[%c0_61, %c0_62] : memref<64x256xbf16, #tpu.memory_space<vmem>>, vector<64x256xbf16>
    %cst_63 = arith.constant dense<0.000000e+00> : vector<8x256xf32>
    %164 = tpu.matmul %24, %163, %cst_63 {dimension_numbers = #tpu.dot_dimension_numbers<[1], [0], [0], [1], [0, 0, 1, 1], [], []>} : vector<8x64xbf16>, vector<64x256xbf16>, vector<8x256xf32> -> vector<8x256xf32>
    %c0_64 = arith.constant 0 : index
    %c0_65 = arith.constant 0 : index
    %165 = vector.load %arg10[%c0_64, %c0_65] : memref<1x256xf32, #tpu.memory_space<vmem>>, vector<1x256xf32>
    %166 = vector.broadcast %165 : vector<1x256xf32> to vector<8x256xf32>
    %167 = arith.addf %164, %166 : vector<8x256xf32>
    %cst_66 = arith.constant 5.000000e-01 : f32
    %168 = vector.broadcast %cst_66 : f32 to vector<8x256xf32>
    %169 = arith.mulf %168, %167 : vector<8x256xf32>
    %cst_67 = arith.constant 0.707106769 : f32
    %170 = vector.broadcast %cst_67 : f32 to vector<8x256xf32>
    %171 = arith.mulf %167, %170 : vector<8x256xf32>
    %172 = math.absf %171 : vector<8x256xf32>
    %cst_68 = arith.constant 0.327591091 : f32
    %173 = vector.broadcast %cst_68 : f32 to vector<8x256xf32>
    %174 = arith.mulf %173, %172 : vector<8x256xf32>
    %cst_69 = arith.constant 1.000000e+00 : f32
    %175 = vector.broadcast %cst_69 : f32 to vector<8x256xf32>
    %176 = arith.addf %175, %174 : vector<8x256xf32>
    %cst_70 = arith.constant 1.000000e+00 : f32
    %177 = vector.broadcast %cst_70 : f32 to vector<8x256xf32>
    %178 = arith.divf %177, %176 : vector<8x256xf32>
    %cst_71 = arith.constant 1.06140542 : f32
    %179 = vector.broadcast %cst_71 : f32 to vector<8x256xf32>
    %180 = arith.mulf %179, %178 : vector<8x256xf32>
    %cst_72 = arith.constant -1.45315206 : f32
    %181 = vector.broadcast %cst_72 : f32 to vector<8x256xf32>
    %182 = arith.addf %180, %181 : vector<8x256xf32>
    %183 = arith.mulf %182, %178 : vector<8x256xf32>
    %cst_73 = arith.constant 1.42141378 : f32
    %184 = vector.broadcast %cst_73 : f32 to vector<8x256xf32>
    %185 = arith.addf %183, %184 : vector<8x256xf32>
    %186 = arith.mulf %185, %178 : vector<8x256xf32>
    %cst_74 = arith.constant -0.284496725 : f32
    %187 = vector.broadcast %cst_74 : f32 to vector<8x256xf32>
    %188 = arith.addf %186, %187 : vector<8x256xf32>
    %189 = arith.mulf %188, %178 : vector<8x256xf32>
    %cst_75 = arith.constant 0.254829586 : f32
    %190 = vector.broadcast %cst_75 : f32 to vector<8x256xf32>
    %191 = arith.addf %189, %190 : vector<8x256xf32>
    %192 = arith.mulf %191, %178 : vector<8x256xf32>
    %cst_76 = arith.constant 0.000000e+00 : f32
    %193 = vector.broadcast %cst_76 : f32 to vector<8x256xf32>
    %194 = arith.subf %193, %172 : vector<8x256xf32>
    %195 = arith.mulf %194, %172 : vector<8x256xf32>
    %196 = math.exp %195 : vector<8x256xf32>
    %197 = arith.mulf %192, %196 : vector<8x256xf32>
    %cst_77 = arith.constant 1.000000e+00 : f32
    %198 = vector.broadcast %cst_77 : f32 to vector<8x256xf32>
    %199 = arith.subf %198, %197 : vector<8x256xf32>
    %cst_78 = arith.constant 0.000000e+00 : f32
    %200 = vector.broadcast %cst_78 : f32 to vector<8x256xf32>
    %201 = arith.cmpf oge, %171, %200 : vector<8x256xf32>
    %cst_79 = arith.constant 0.000000e+00 : f32
    %202 = vector.broadcast %cst_79 : f32 to vector<8x256xf32>
    %203 = arith.subf %202, %199 : vector<8x256xf32>
    %204 = arith.select %201, %199, %203 : vector<8x256xi1>, vector<8x256xf32>
    %cst_80 = arith.constant 1.000000e+00 : f32
    %205 = vector.broadcast %cst_80 : f32 to vector<8x256xf32>
    %206 = arith.addf %205, %204 : vector<8x256xf32>
    %207 = arith.mulf %169, %206 : vector<8x256xf32>
    %208 = arith.truncf %207 : vector<8x256xf32> to vector<8x256xbf16>
    %c0_81 = arith.constant 0 : index
    %c0_82 = arith.constant 0 : index
    %209 = vector.load %arg11[%c0_81, %c0_82] : memref<256x64xbf16, #tpu.memory_space<vmem>>, vector<256x64xbf16>
    %cst_83 = arith.constant dense<0.000000e+00> : vector<8x64xf32>
    %210 = tpu.matmul %208, %209, %cst_83 {dimension_numbers = #tpu.dot_dimension_numbers<[1], [0], [0], [1], [0, 0, 1, 1], [], []>} : vector<8x256xbf16>, vector<256x64xbf16>, vector<8x64xf32> -> vector<8x64xf32>
    %c0_84 = arith.constant 0 : index
    %c0_85 = arith.constant 0 : index
    %211 = vector.load %arg12[%c0_84, %c0_85] : memref<1x64xf32, #tpu.memory_space<vmem>>, vector<1x64xf32>
    %212 = vector.broadcast %211 : vector<1x64xf32> to vector<8x64xf32>
    %213 = arith.addf %210, %212 : vector<8x64xf32>
    %214 = arith.addf %162, %213 : vector<8x64xf32>
    %215 = tpu.concatenate %214, %1 in 1 : vector<8x64xf32>, vector<8x64xf32> -> vector<8x128xf32>
    %216 = arith.truncf %215 : vector<8x128xf32> to vector<8x128xbf16>
    %c0_86 = arith.constant 0 : index
    %c0_87 = arith.constant 0 : index
    %217 = vector.load %arg13[%c0_86, %c0_87] : memref<8x128xbf16, #tpu.memory_space<vmem>>, vector<8x128xbf16>
    tpu.vector_store %arg13[%c0_86, %c0_87], %216 {strides = array<i32>} : memref<8x128xbf16, #tpu.memory_space<vmem>>, vector<8x128xbf16>,
    return
  }
}

</mosaic_0001>

<bundles_post_ra>
// kernel: forward.5
= control target key start
LH: loop header
LB: loop body
LE: loop exit
PB: predicated region body
PF: predicated region fallthrough
CT: control target
= control target key end

     0   :  { %s247_s0 = inlined_call_operand.vmem [shape: bf16[1,128], index: 0, kind: input, shape index: {}]   ;;  %s248_s1 = inlined_call_operand.vmem [shape: f32[1,64], index: 1, kind: input, shape index: {}]   ;;  %s249_s2 = inlined_call_operand.vmem [shape: f32[1,64], index: 2, kind: input, shape index: {}]   ;;  %s250_s3 = inlined_call_operand.vmem [shape: bf16[64,128], index: 3, kind: input, shape index: {}]   ;;  %s251_s4 = inlined_call_operand.vmem [shape: f32[1,128], index: 4, kind: input, shape index: {}]   ;;  %s252_s5 = inlined_call_operand.hbm [shape: f32[1,128], index: 5, kind: output, shape index: {}]  }
   0x1   :  { %v22_v0 = vld [vmem:[%s247_s0] sm:$0x1] }
   0x2   :  { %10 = vsyncpa [#allocation3], 0  ;;  %v23_v1 = vunpack.c.l.bf16 %v22_v0  ;;  %s185_s20 = smov 64   ;;  %vm29_vm0 = vcmask 516096   ;;  %v186_v5 = vmov 64.0   ;;  %v151_v17 = vld [vmem:[%s250_s3 + $0x18] sm:$0xff] }
   0x3   :  { %155 = vrcp.f32 %v186_v5  ;;  %105 = vmatpush.bf16.msra.mxu0 %v151_v17  ;;  %v150_v18 = vld [vmem:[%s250_s3 + $0x10] sm:$0xff]  ;;  %v149_v19 = vld [vmem:[%s250_s3 + $0x8] sm:$0xff]  ;;  %v148_v20 = vld [vmem:[%s250_s3] sm:$0xff]  ;;  %vm97_vm5 = vcmask 523264   ;;  %s187_s8 = smov [#allocation2]  }
   0x4   :  { %25 = vrot.lane.b32.xlu0 %v23_v1, %s185_s20  ;;  %v59_v31 = vld [vmem:[%s248_s1] sm:$0x1]  ;;  %s120_s9 = sshll.u32 %s187_s8, 4  ;;  %s122_s1 = sshll.u32 %s252_s5, 4  ;;  %s121_s9 = int_to_ptr.vmem [resolvable:$true] %s120_s9  ;;  %s123_s1 = int_to_ptr.hbm [resolvable:$true] %s122_s1 }
   0x5   :  { %v61_v33 = vld [vmem:[%s249_s2] sm:$0x1] }
   0x6   :  { %v72_v37 = vld [vmem:[%s251_s4] sm:$0x1] }
   0x7   :  { %106 = vmatpush.bf16.msra.mxu0 %v150_v18 }
   0x9   :  { %v156_v6 = vpop.eup %155 }
   0xa   :  { %v34_v7 = vmul.f32 64.0, %v156_v6  ;;  %vm38_vm1 = vweird.f32 %v156_v6 }
   0xb   :  { %107 = vmatpush.bf16.msra.mxu0 %v149_v19 }
   0xc   :  { %v35_v8 = vsub.f32 1.0, %v34_v7 }
   0xe   :  { %v36_v9 = vmul.f32 %v156_v6, %v35_v8 }
   0xf   :  { %108 = vmatpush.bf16.msra.mxu0 %v148_v20 }
  0x10   :  { %v37_v10 = vadd.f32 %v156_v6, %v36_v9 }
  0x12   :  { %v39_v11 = vsel %vm38_vm1, %v156_v6, %v37_v10 }
  0x76   :  { %v26_v2 = vpop.permute.xlu0 %25 }
  0x77   :  { %v28_v3 = vadd.f32 %v26_v2, %v23_v1 }
  0x79   :  { %v30_v4 = vsel %vm29_vm0, %v28_v3, 0.0 }
  0x7a   :  { %31 = vadd.xlane.f32.xlu0 %v30_v4 }
  0xed   :  { %v32_v12 = vpop.xlane.xlu0 %31 }
  0xee   :  { %v40_v13 = vmul.f32 %v39_v11, %v32_v12 }
  0xf0   :  { %v41_v14 = vsub.f32 %v28_v3, %v40_v13 }
  0xf2   :  { %v42_v15 = vmul.f32 %v41_v14, %v41_v14 }
  0xf4   :  { %v43_v16 = vsel %vm29_vm0, %v42_v15, 0.0 }
  0xf5   :  { %44 = vadd.xlane.f32.xlu1 %v43_v16 }
 0x168   :  { %v45_v21 = vpop.xlane.xlu1 %44 }
 0x169   :  { %v46_v22 = vmul.f32 %v45_v21, %v39_v11 }
 0x16b   :  { %v47_v23 = vadd.f32 1e-05, %v46_v22 }
 0x16d   :  { %157 = vrsqrt.f32 %v47_v23  ;;  %vm54_vm3 = vweird.f32 %v47_v23 }
 0x173   :  { %v158_v24 = vpop.eup %157 }
 0x174   :  { %v49_v25 = vmul.f32 %v158_v24, %v47_v23  ;;  %vm55_vm2 = vweird.f32 %v158_v24 }
 0x175   :  { %vm56_vm4 = vmor %vm54_vm3, %vm55_vm2 }
 0x176   :  { %v50_v26 = vmul.f32 %v158_v24, %v49_v25 }
 0x178   :  { %v51_v27 = vmul.f32 0.5, %v50_v26 }
 0x17a   :  { %v52_v28 = vsub.f32 1.5, %v51_v27 }
 0x17c   :  { %v53_v29 = vmul.f32 %v158_v24, %v52_v28 }
 0x17e   :  { %v57_v30 = vsel %vm56_vm4, %v158_v24, %v53_v29 }
 0x17f   :  { %v58_v32 = vmul.f32 %v57_v30, %v41_v14 }
 0x181   :  { %v60_v34 = vmul.f32 %v59_v31, %v58_v32 }
 0x183   :  { %v62_v35 = vadd.f32 %v61_v33, %v60_v34 }
 0x185   :  { %v63_v36 = vpack.c.bf16 %v62_v35, %v62_v35 }
 0x187   :  { %147 = vmatmul.msk.bf16.vlgmr.msra.gmra.mxu0 %vm97_vm5, %v63_v36 }
 0x204   :  { %v110_v38 = vpop.f32.mrf.mxu0 }
 0x205   :  { %v111_v39 = vadd.f32 %v110_v38, %v72_v37 }
 0x207   :  { %114 = vst [vmem:[#allocation2] sm:$0x1] %v111_v39 }
 0x208   :  { %125 = dma.vmem_to_hbm [thread:$0]  %s121_s9, 16, %s123_s1, [#allocation3]  }
 0x20c   :  { %v112_v40 = vpop.f32.mrf.mxu0 }
 0x20d   :  { %183 = dma.done.wait [#allocation3], 16  }
 0x20e   :  { %184 = vsyncadd [#allocation3], 4294967280 }
 0x20f   :  { %130 = vsyncpa [#allocation3], 1 }

// kernel: forward.4
= control target key start
LH: loop header
LB: loop body
LE: loop exit
PB: predicated region body
PF: predicated region fallthrough
CT: control target
= control target key end

     0   :  { %s1171_s27 = smov 64   ;;  %vm52_vm0 = vcmask 523264   ;;  %v1172_v5 = vmov 64.0   ;;  %v178_v58 = vlaneseq  ;;  %vm332_vm9 = vcmask 1043456   ;;  %s1177_s16 = smov 60   ;;  %s1588_s0 = inlined_call_operand.vmem [shape: bf16[8,128], index: 0, kind: input, shape index: {}, may-alias: {0,13}]   ;;  %s1589_s3 = inlined_call_operand.vmem [shape: f32[1,64], index: 3, kind: input, shape index: {}]   ;;  %s1590_s4 = inlined_call_operand.vmem [shape: f32[1,64], index: 4, kind: input, shape index: {}]   ;;  %s1591_s5 = inlined_call_operand.vmem [shape: bf16[64,192], index: 5, kind: input, shape index: {}]   ;;  %s1592_s2 = inlined_call_operand.vmem [shape: f32[8,16], index: 2, kind: input, shape index: {}]   ;;  %s1593_s6 = inlined_call_operand.vmem [shape: f32[1,192], index: 6, kind: input, shape index: {}]   ;;  %s1594_s1 = inlined_call_operand.vmem [shape: f32[8,16], index: 1, kind: input, shape index: {}]   ;;  %s1595_s9 = inlined_call_operand.vmem [shape: bf16[64,256], index: 9, kind: input, shape index: {}]   ;;  %s1596_s10 = inlined_call_operand.vmem [shape: f32[1,256], index: 10, kind: input, shape index: {}]   ;;  %s1597_s11 = inlined_call_operand.vmem [shape: bf16[256,64], index: 11, kind: input, shape index: {}]   ;;  %s1598_s12 = inlined_call_operand.vmem [shape: f32[1,64], index: 12, kind: input, shape index: {}]   ;;  %s1599_s7 = inlined_call_operand.vmem [shape: bf16[64,64], index: 7, kind: input, shape index: {}]   ;;  %s1600_s8 = inlined_call_operand.vmem [shape: f32[1,64], index: 8, kind: input, shape index: {}]   ;;  %s1601_s13 = inlined_call_operand.vmem [shape: bf16[8,128], index: 13, kind: output, shape index: {}, may-alias: {0,13}]  }
   0x1   :  { %v45_v0 = vld [vmem:[%s1588_s0] sm:$0xf]  ;;  %1143 = vrcp.f32 %v1172_v5  ;;  %v960_v17 = vld [vmem:[%s1591_s5 + $0x30] sm:$0xf]  ;;  %v1098_v18 = vld [vmem:[%s1591_s5 + $0x34] sm:$0xf0] }
   0x2   :  { %v46_v1 = vunpack.c.l.bf16 %v45_v0  ;;  %v961_v19 = vor.u32 %v1098_v18, %v960_v17  ;;  %v952_v20 = vld [vmem:[%s1591_s5 + $0x20] sm:$0xf]  ;;  %v1096_v21 = vld [vmem:[%s1591_s5 + $0x24] sm:$0xf0]  ;;  %v944_v23 = vld [vmem:[%s1591_s5 + $0x10] sm:$0xf] }
   0x3   :  { %v953_v22 = vor.u32 %v1096_v21, %v952_v20  ;;  %v1094_v24 = vld [vmem:[%s1591_s5 + $0x14] sm:$0xf0]  ;;  %v936_v26 = vld [vmem:[%s1591_s5] sm:$0xf]  ;;  %v1092_v27 = vld [vmem:[%s1591_s5 + $0x4] sm:$0xf0] }
   0x4   :  { %48 = vrot.lane.b32.xlu0 %v46_v1, %s1171_s27  ;;  %154 = vmatpush.bf16.msra.mxu1 %v961_v19  ;;  %v945_v25 = vor.u32 %v1094_v24, %v944_v23  ;;  %v937_v28 = vor.u32 %v1092_v27, %v936_v26  ;;  %v1097_v29 = vld [vmem:[%s1591_s5 + $0x34] sm:$0xf]  ;;  %v962_v30 = vld [vmem:[%s1591_s5 + $0x38] sm:$0xf0]  ;;  %v1095_v32 = vld [vmem:[%s1591_s5 + $0x24] sm:$0xf] }
   0x5   :  { %v965_v31 = vor.u32 %v1097_v29, %v962_v30  ;;  %v954_v33 = vld [vmem:[%s1591_s5 + $0x28] sm:$0xf0]  ;;  %v1093_v37 = vld [vmem:[%s1591_s5 + $0x14] sm:$0xf]  ;;  %v946_v38 = vld [vmem:[%s1591_s5 + $0x18] sm:$0xf0] }
   0x6   :  { %v957_v35 = vor.u32 %v1095_v32, %v954_v33  ;;  %v949_v40 = vor.u32 %v1093_v37, %v946_v38  ;;  %v1091_v41 = vld [vmem:[%s1591_s5 + $0x4] sm:$0xf]  ;;  %v938_v42 = vld [vmem:[%s1591_s5 + $0x8] sm:$0xf0]  ;;  %v1139_v50 = vld [vmem:[%s1589_s3] ss:$0 sm:$0xff] }
   0x7   :  { %v1144_v6 = vpop.eup %1143  ;;  %v941_v43 = vor.u32 %v1091_v41, %v938_v42  ;;  %v1140_v53 = vld [vmem:[%s1590_s4] ss:$0 sm:$0xff]  ;;  %v1330_v61 = vand.u32 127, %v178_v58  ;;  %s1173_s4 = smov 16   ;;  %vm197_vm10 = vcmask 130048   ;;  %vm199_vm11 = vcmask 261120  }
   0x8   :  { %v57_v7 = vmul.f32 64.0, %v1144_v6  ;;  %vm61_vm1 = vweird.f32 %v1144_v6  ;;  %155 = vmatpush.bf16.msra.mxu1 %v953_v22  ;;  %v177_v57 = vld [vmem:[%s1592_s2] sm:$0xff]  ;;  %s1174_s2 = smov 32   ;;  %vm201_vm12 = vcmask 392192   ;;  %vm229_vm13 = vcmask 1048064   ;;  %s1178_s17 = smov 68  }
   0x9   :  { %v181_v59 = vsub.f32 0.0, %v177_v57  ;;  %v101_v60 = vld [vmem:[%s1593_s6] sm:$0x3]  ;;  %vm180_vm5 = vcmp.lt.s32.totalorder %v1330_v61, 4  ;;  %vm183_vm6 = vcmp.ge.s32.totalorder %v1330_v61, 4  ;;  %vm184_vm7 = vcmp.lt.s32.totalorder %v1330_v61, 8 }
   0xa   :  { %v58_v8 = vsub.f32 1.0, %v57_v7  ;;  %v103_v62 = vperm.slane %v101_v60, 0  ;;  %vm185_vm8 = vmand %vm183_vm6, %vm184_vm7  ;;  %v104_v5 = vperm.slane %v101_v60, 1  ;;  %s1175_s6 = smov 48   ;;  %v176_v7 = vld [vmem:[%s1594_s1] sm:$0xff]  ;;  %s1176_s1 = smov 4  }
   0xb   :  { %v182_v63 = vsel %vm180_vm5, %v181_v59, 0.0  ;;  %s1179_s18 = smov 124   ;;  %s1180_s19 = smov 112   ;;  %vm316_vm15 = vcmask 64512  }
   0xc   :  { %v59_v9 = vmul.f32 %v1144_v6, %v58_v8  ;;  %156 = vmatpush.bf16.msra.mxu1 %v945_v25  ;;  %204 = vrot.lane.b32.xlu2 %v182_v63, %s1173_s4  ;;  %s1181_s20 = smov 96   ;;  %s1182_s21 = smov 80  }
   0xe   :  { %v60_v10 = vadd.f32 %v1144_v6, %v59_v9 }
  0x10   :  { %v62_v11 = vsel %vm61_vm1, %v1144_v6, %v60_v10  ;;  %157 = vmatpush.bf16.msra.mxu1 %v937_v28  ;;  %vm418_vm1 = vcmask 261248  }
  0x14   :  { %167 = vmatpush.bf16.msrb.mxu1 %v965_v31  ;;  %207 = vrot.lane.b32.xlu2 %v182_v63, %s1174_s2 }
  0x18   :  { %168 = vmatpush.bf16.msrb.mxu1 %v957_v35 }
  0x1c   :  { %169 = vmatpush.bf16.msrb.mxu1 %v949_v40  ;;  %210 = vrot.lane.b32.xlu2 %v182_v63, %s1175_s6 }
  0x20   :  { %170 = vmatpush.bf16.msrb.mxu1 %v941_v43 }
  0x76   :  { %v49_v2 = vpop.permute.xlu0 %48 }
  0x77   :  { %v1257_v3 = vadd.f32 %v49_v2, %v46_v1 }
  0x79   :  { %v53_v4 = vsel %vm52_vm0, %v1257_v3, 0.0 }
  0x7a   :  { %54 = vadd.xlane.f32.xlu0 %v53_v4  ;;  %v186_v4 = vsel %vm185_vm8, %v177_v57, 0.0 }
  0x7b   :  { %217 = vrot.lane.b32.xlu2 %v186_v4, %s1173_s4 }
  0xed   :  { %v55_v12 = vpop.xlane.xlu0 %54 }
  0xee   :  { %v63_v13 = vmul.f32 %v62_v11, %v55_v12  ;;  %v205_v12 = vpop.permute.xlu2 %204 }
  0xf0   :  { %v64_v14 = vsub.f32 %v1257_v3, %v63_v13 }
  0xf2   :  { %v65_v15 = vmul.f32 %v64_v14, %v64_v14 }
  0xf4   :  { %v66_v16 = vsel %vm52_vm0, %v65_v15, 0.0  ;;  %v213_v15 = vsel %vm197_vm10, %v182_v63, %v205_v12 }
  0xf5   :  { %67 = vadd.xlane.f32.xlu1 %v66_v16 }
 0x168   :  { %v68_v34 = vpop.xlane.xlu1 %67 }
 0x169   :  { %v69_v36 = vmul.f32 %v68_v34, %v62_v11 }
 0x16b   :  { %v70_v39 = vadd.f32 1e-05, %v69_v36 }
 0x16d   :  { %1145 = vrsqrt.f32 %v70_v39  ;;  %vm77_vm3 = vweird.f32 %v70_v39 }
 0x173   :  { %v1146_v44 = vpop.eup %1145 }
 0x174   :  { %v72_v45 = vmul.f32 %v1146_v44, %v70_v39  ;;  %vm78_vm2 = vweird.f32 %v1146_v44 }
 0x175   :  { %vm79_vm4 = vmor %vm77_vm3, %vm78_vm2  ;;  %vm482_vm2 = vcmask 392448  }
 0x176   :  { %v73_v46 = vmul.f32 %v1146_v44, %v72_v45 }
 0x178   :  { %v74_v47 = vmul.f32 0.5, %v73_v46 }
 0x17a   :  { %v75_v48 = vsub.f32 1.5, %v74_v47 }
 0x17c   :  { %v76_v49 = vmul.f32 %v1146_v44, %v75_v48 }
 0x17e   :  { %v80_v51 = vsel %vm79_vm4, %v1146_v44, %v76_v49 }
 0x17f   :  { %v81_v52 = vmul.f32 %v80_v51, %v64_v14  ;;  %v208_v14 = vpop.permute.xlu2 %207 }
 0x180   :  { %v214_v16 = vsel %vm199_vm11, %v213_v15, %v208_v14 }
 0x181   :  { %v86_v54 = vmul.f32 %v1139_v50, %v81_v52 }
 0x183   :  { %v91_v55 = vadd.f32 %v1140_v53, %v86_v54 }
 0x185   :  { %v1317_v56 = vpack.c.bf16 %v91_v55, %v91_v55 }
 0x187   :  { %966 = vmatmul.msk.bf16.vlgmr.msra.gmra.mxu1 %vm52_vm0, %v1317_v56  ;;  %v211_v17 = vpop.permute.xlu2 %210 }
 0x188   :  { %v215_v18 = vsel %vm201_vm12, %v214_v16, %v211_v17 }
 0x18f   :  { %v218_v19 = vpop.permute.xlu2 %217 }
 0x190   :  { %v226_v23 = vsel %vm197_vm10, %v186_v4, %v218_v19 }
 0x197   :  { %967 = vmatmul.msk.bf16.vlgmr.msrb.gmra.mxu1 %vm52_vm0, %v1317_v56 }
 0x204   :  { %v159_v0 = vpop.f32.mrf.mxu1 }
 0x205   :  { %v1334_v1 = vadd.f32 %v159_v0, %v103_v62 }
 0x207   :  { %258 = vrot.lane.b32.xlu1 %v1334_v1, %s1171_s27 }
 0x20c   :  { %v161_v2 = vpop.f32.mrf.mxu1 }
 0x20f   :  { %220 = vrot.lane.b32.xlu1 %v186_v4, %s1174_s2 }
 0x214   :  { %v172_v6 = vpop.f32.mrf.mxu1 }
 0x215   :  { %v173_v8 = vadd.f32 %v172_v6, %v104_v5 }
 0x217   :  { %v1346_v9 = vpack.c.bf16 %v173_v8, %v173_v8  ;;  %188 = vrot.lane.b32.xlu1 %v176_v7, %s1173_s4 }
 0x219   :  { %v334_v10 = vsel %vm332_vm9, %v1346_v9, 0  ;;  %v391_v19 = vunpack.c.l.b16 %v1346_v9 }
 0x21a   :  { %343 = vmatpush.bf16.msra.mxu3 %v334_v10 }
 0x21c   :  { %v174_v11 = vpop.f32.mrf.mxu1 }
 0x21f   :  { %194 = vrot.lane.b32.xlu1 %v176_v7, %s1175_s6 }
 0x279   :  { %v259_v13 = vpop.permute.xlu1 %258 }
 0x27a   :  { %261 = vrot.lane.b32.xlu2 %v259_v13, %s1171_s27 }
 0x281   :  { %v221_v20 = vpop.permute.xlu1 %220 }
 0x282   :  { %223 = vrot.lane.b32.xlu2 %v186_v4, %s1175_s6  ;;  %v227_v25 = vsel %vm199_vm11, %v226_v23, %v221_v20  ;;  %v1407_v20 = vpack.c.b16 %v391_v19, %v391_v19  ;;  %v1013_v19 = vld [vmem:[%s1595_s9 + $0x28] sm:$0xf0] }
 0x289   :  { %v189_v24 = vpop.permute.xlu1 %188 }
 0x28a   :  { %191 = vrot.lane.b32.xlu2 %v176_v7, %s1174_s2  ;;  %v198_v28 = vsel %vm197_vm10, %v176_v7, %v189_v24 }
 0x291   :  { %v195_v29 = vpop.permute.xlu1 %194 }
 0x292   :  { %238 = vrot.lane.b32.xlu2 %v215_v18, %s1176_s1 }
 0x29a   :  { %230 = vrot.lane.b32.xlu2 %v1334_v1, %s1171_s27 }
 0x2d4   :  { %v262_v21 = vpop.permute.xlu2 %261 }
 0x2d5   :  { %v263_v22 = vsel %vm229_vm13, %v262_v21, %v259_v13 }
 0x2d6   :  { %264 = vrot.lane.b32.xlu0 %v263_v22, %s1171_s27 }
 0x2dc   :  { %v224_v26 = vpop.permute.xlu2 %223 }
 0x2dd   :  { %v228_v27 = vsel %vm201_vm12, %v227_v25, %v224_v26 }
 0x2de   :  { %248 = vrot.lane.b32.xlu1 %v228_v27, %s1177_s16 }
 0x2e4   :  { %v192_v30 = vpop.permute.xlu2 %191 }
 0x2e5   :  { %v200_v31 = vsel %vm199_vm11, %v198_v28, %v192_v30 }
 0x2e6   :  { %v202_v32 = vsel %vm201_vm12, %v200_v31, %v195_v29  ;;  %vm546_vm12 = vcmask 523648  }
 0x2e7   :  { %268 = vrot.lane.b32.xlu1 %v202_v32, %s1171_s27  ;;  %v236_v55 = vmul.f32 %v202_v32, %v1334_v1 }
 0x2ec   :  { %v239_v33 = vpop.permute.xlu2 %238 }
 0x2f4   :  { %v231_v34 = vpop.permute.xlu2 %230 }
 0x2f5   :  { %v232_v35 = vsel %vm229_vm13, %v231_v34, %v1334_v1 }
 0x2f6   :  { %233 = vrot.lane.b32.xlu1 %v232_v35, %s1171_s27 }
 0x348   :  { %v265_v36 = vpop.permute.xlu0 %264 }
 0x349   :  { %v266_v37 = vsel %vm229_vm13, %v265_v36, %v259_v13 }
 0x34a   :  { %v272_v38 = vmul.f32 %v266_v37, %v239_v33 }
 0x34c   :  { %274 = vrot.lane.b32.xlu0 %v272_v38, %s1177_s16 }
 0x350   :  { %v249_v39 = vpop.permute.xlu1 %248 }
 0x351   :  { %v278_v40 = vmul.f32 %v266_v37, %v249_v39 }
 0x353   :  { %280 = vrot.lane.b32.xlu2 %v278_v40, %s1176_s1 }
 0x359   :  { %v269_v41 = vpop.permute.xlu1 %268 }
 0x35a   :  { %v271_v46 = vmul.f32 %v269_v41, %v1334_v1 }
 0x368   :  { %v234_v42 = vpop.permute.xlu1 %233 }
 0x369   :  { %v235_v43 = vsel %vm229_vm13, %v234_v42, %v1334_v1  ;;  %v1394_v1 = vshrl.u32 %v178_v58, 7 }
 0x36a   :  { %v241_v44 = vmul.f32 %v239_v33, %v235_v43  ;;  %v251_v45 = vmul.f32 %v249_v39, %v235_v43 }
 0x36b   :  { %vm286_vm14 = vcmp.le.s32.totalorder %v1330_v61, %v1394_v1 }
 0x36c   :  { %253 = vrot.lane.b32.xlu1 %v251_v45, %s1178_s17  ;;  %243 = vrot.lane.b32.xlu2 %v241_v44, %s1179_s18 }
 0x3ad   :  { %v281_v49 = vpop.permute.xlu2 %280 }
 0x3be   :  { %v275_v47 = vpop.permute.xlu0 %274 }
 0x3bf   :  { %v277_v48 = vadd.f32 %v275_v47, %v271_v46 }
 0x3c1   :  { %v283_v50 = vadd.f32 %v281_v49, %v277_v48 }
 0x3c3   :  { %v288_v51 = vpack.c.bf16 %v283_v50, %v283_v50 }
 0x3c5   :  { %v291_v52 = vunpack.c.l.b16 %v288_v51 }
 0x3c6   :  { %v244_v54 = vpop.permute.xlu2 %243 }
 0x3c7   :  { %v1379_v53 = vpack.c.b16 %v291_v52, %v291_v52  ;;  %v246_v57 = vadd.f32 %v244_v54, %v236_v55  ;;  %v1019_v54 = vld [vmem:[%s1595_s9 + $0x30] sm:$0xf]  ;;  %v1110_v55 = vld [vmem:[%s1595_s9 + $0x34] sm:$0xf0] }
 0x3c9   :  { %293 = vrot.lane.b32.xlu0 %v1379_v53, %s1171_s27  ;;  %355 = vrot.lane.b32.xlu1 %v1379_v53, %s1175_s6 }
 0x3de   :  { %v254_v59 = vpop.permute.xlu1 %253 }
 0x3df   :  { %v256_v60 = vadd.f32 %v254_v59, %v246_v57  ;;  %v1020_v57 = vor.u32 %v1110_v55, %v1019_v54  ;;  %v1011_v59 = vld [vmem:[%s1595_s9 + $0x20] sm:$0xf] }
 0x3e1   :  { %v287_v62 = vpack.c.bf16 %v256_v60, %v256_v60  ;;  %v1108_v60 = vld [vmem:[%s1595_s9 + $0x24] sm:$0xf0] }
 0x3e3   :  { %v351_v63 = vunpack.c.l.b16 %v287_v62 }
 0x3e5   :  { %v1386_v0 = vpack.c.b16 %v351_v63, %v351_v63  ;;  %v1003_v63 = vld [vmem:[%s1595_s9 + $0x10] sm:$0xf] }
 0x3e7   :  { %353 = vrot.lane.b32.xlu1 %v1386_v0, %s1180_s19 }
 0x43b   :  { %v294_v2 = vpop.permute.xlu0 %293  ;;  %v356_v4 = vpop.permute.xlu1 %355 }
 0x43c   :  { %v299_v5 = vsel %vm197_vm10, %v294_v2, 0  ;;  %v361_v6 = vsel %vm197_vm10, %v356_v4, 0  ;;  %v995_v4 = vld [vmem:[%s1595_s9] sm:$0xf] }
 0x43d   :  { %308 = vmatpush.bf16.xpose.msra.mxu2 %v299_v5  ;;  %370 = vmatpush.bf16.xpose.msrb.mxu3 %v361_v6  ;;  %v1104_v5 = vld [vmem:[%s1595_s9 + $0x4] sm:$0xf0] }
 0x43e   :  { %v996_v6 = vor.u32 %v1104_v5, %v995_v4 }
 0x444   :  { %968 = vmatmul.msk.bf16.vlgmr.msra.gmra.mxu2 %vm197_vm10, %v287_v62  ;;  %v1012_v62 = vor.u32 %v1108_v60, %v1011_v59 }
 0x459   :  { %v354_v27 = vpop.permute.xlu1 %353 }
 0x4c7   :  { %v310_v7 = vpop.f32.mrf.mxu2 }
 0x4c8   :  { %v314_v8 = vmul.f32 0.25, %v310_v7 }
 0x4ca   :  { %v315_v10 = vsel %vm286_vm14, %v314_v8, -1e+30 }
 0x4cb   :  { %v317_v11 = vsel %vm316_vm15, %v315_v10, -inf }
 0x4cc   :  { %318 = vmax.xlane.f32.xlu0 %v317_v11 }
 0x4cf   :  { %v312_v12 = vpop.f32.mrf.mxu2 }
 0x4e0   :  { %422 = vrot.lane.b32.xlu0 %v1379_v53, %s1174_s2 }
 0x53f   :  { %v319_v13 = vpop.xlane.xlu0 %318 }
 0x540   :  { %v320_v58 = vsub.f32 %v315_v10, %v319_v13  ;;  %v1109_v13 = vld [vmem:[%s1595_s9 + $0x34] sm:$0xf] }
 0x542   :  { %v321_v14 = vmul.f32 1.442695, %v320_v58  ;;  %v1021_v58 = vld [vmem:[%s1595_s9 + $0x38] sm:$0xf0] }
 0x544   :  { %1147 = vpow2.f32 %v321_v14 }
 0x54a   :  { %v1148_v15 = vpop.eup %1147 }
 0x54b   :  { %v323_v16 = vsel %vm316_vm15, %v1148_v15, 0.0 }
 0x54c   :  { %324 = vadd.xlane.f32.xlu2 %v323_v16  ;;  %v1024_v16 = vor.u32 %v1109_v13, %v1021_v58 }
 0x552   :  { %v423_v17 = vpop.permute.xlu0 %422 }
 0x553   :  { %v428_v18 = vsel %vm197_vm10, %v423_v17, 0 }
 0x554   :  { %437 = vmatpush.bf16.xpose.msra.mxu0 %v428_v18  ;;  %v1107_v18 = vld [vmem:[%s1595_s9 + $0x24] sm:$0xf] }
 0x564   :  { %393 = vrot.lane.b32.xlu2 %v1407_v20, %s1180_s19 }
 0x56c   :  { %420 = vrot.lane.b32.xlu2 %v1386_v0, %s1181_s20 }
 0x5bf   :  { %v325_v21 = vpop.xlane.xlu2 %324 }
 0x5c0   :  { %1149 = vrcp.f32 %v325_v21  ;;  %v1016_v21 = vor.u32 %v1107_v18, %v1013_v19 }
 0x5c6   :  { %v1150_v22 = vpop.eup %1149 }
 0x5c7   :  { %v394_v23 = vpop.permute.xlu2 %393  ;;  %v327_v24 = vmul.f32 %v1150_v22, %v1148_v15  ;;  %v1105_v22 = vld [vmem:[%s1595_s9 + $0x14] sm:$0xf] }
 0x5c8   :  { %v399_v26 = vsel %vm332_vm9, %v394_v23, 0  ;;  %v1005_v23 = vld [vmem:[%s1595_s9 + $0x18] sm:$0xf0] }
 0x5c9   :  { %v328_v25 = vpack.c.bf16 %v327_v24, %v327_v24  ;;  %v1008_v24 = vor.u32 %v1105_v22, %v1005_v23  ;;  %v1117_v22 = vld [vmem:[%s1597_s11 + $0x30] sm:$0xff] }
 0x5cb   :  { %969 = vmatmul.msk.bf16.vlgmr.msra.gmra.mxu3 %vm316_vm15, %v328_v25  ;;  %v1103_v25 = vld [vmem:[%s1595_s9 + $0x4] sm:$0xf] }
 0x5cc   :  { %408 = vmatpush.bf16.msra.mxu3 %v399_v26  ;;  %v997_v26 = vld [vmem:[%s1595_s9 + $0x8] sm:$0xf0] }
 0x5cf   :  { %v421_v9 = vpop.permute.xlu2 %420 }
 0x5d0   :  { %972 = vmatmul.msk.bf16.vlgmr.msra.gmra.mxu0 %vm197_vm10, %v421_v9  ;;  %v1000_v9 = vor.u32 %v1103_v25, %v997_v26 }
 0x5db   :  { %970 = vmatmul.msk.bf16.vlgmr.msrb.gmra.mxu3 %vm197_vm10, %v354_v27 }
 0x64d   :  { %v439_v28 = vpop.f32.mrf.mxu0 }
 0x64e   :  { %v443_v29 = vmul.f32 0.25, %v439_v28  ;;  %v345_v30 = vpop.f32.mrf.mxu3 }
 0x64f   :  { %349 = vst.msk [vmem:[#allocation2] sm:$0xff] %vm197_vm10, %v345_v30 }
 0x650   :  { %v444_v31 = vsel %vm286_vm14, %v443_v29, -1e+30 }
 0x651   :  { %v445_v32 = vsel %vm316_vm15, %v444_v31, -inf }
 0x652   :  { %446 = vmax.xlane.f32.xlu2 %v445_v32 }
 0x655   :  { %v441_v33 = vpop.f32.mrf.mxu0 }
 0x656   :  { %v347_v34 = vpop.f32.mrf.mxu3 }
 0x65e   :  { %v372_v35 = vpop.f32.mrf.mxu3 }
 0x65f   :  { %v376_v36 = vmul.f32 0.25, %v372_v35 }
 0x661   :  { %v377_v37 = vsel %vm286_vm14, %v376_v36, -1e+30 }
 0x662   :  { %v378_v38 = vsel %vm316_vm15, %v377_v37, -inf }
 0x663   :  { %379 = vmax.xlane.f32.xlu1 %v378_v38 }
 0x666   :  { %v374_v39 = vpop.f32.mrf.mxu3 }
 0x66a   :  { %457 = vrot.lane.b32.xlu2 %v1407_v20, %s1181_s20 }
 0x67c   :  { %486 = vrot.lane.b32.xlu1 %v1379_v53, %s1173_s4 }
 0x6c5   :  { %v447_v40 = vpop.xlane.xlu2 %446 }
 0x6c6   :  { %v448_v41 = vsub.f32 %v444_v31, %v447_v40 }
 0x6c8   :  { %v449_v42 = vmul.f32 1.442695, %v448_v41 }
 0x6ca   :  { %1151 = vpow2.f32 %v449_v42 }
 0x6cd   :  { %v458_v43 = vpop.permute.xlu2 %457 }
 0x6ce   :  { %v463_v44 = vsel %vm332_vm9, %v458_v43, 0 }
 0x6cf   :  { %472 = vmatpush.bf16.msra.mxu1 %v463_v44 }
 0x6d0   :  { %v1152_v45 = vpop.eup %1151 }
 0x6d1   :  { %v451_v46 = vsel %vm316_vm15, %v1152_v45, 0.0 }
 0x6d2   :  { %452 = vadd.xlane.f32.xlu1 %v451_v46 }
 0x6d3   :  { %660 = vmatpush.bf16.msrb.mxu1 %v1020_v57 }
 0x6d6   :  { %v380_v47 = vpop.xlane.xlu1 %379 }
 0x6d7   :  { %v381_v48 = vsub.f32 %v377_v37, %v380_v47  ;;  %661 = vmatpush.bf16.msrb.mxu1 %v1012_v62 }
 0x6d9   :  { %v382_v49 = vmul.f32 1.442695, %v381_v48 }
 0x6db   :  { %1153 = vpow2.f32 %v382_v49 }
 0x6e1   :  { %v1154_v50 = vpop.eup %1153 }
 0x6e2   :  { %v384_v51 = vsel %vm316_vm15, %v1154_v50, 0.0 }
 0x6e3   :  { %385 = vadd.xlane.f32.xlu0 %v384_v51 }
 0x6ee   :  { %v487_v52 = vpop.permute.xlu1 %486 }
 0x6ef   :  { %v492_v53 = vsel %vm197_vm10, %v487_v52, 0 }
 0x6f0   :  { %501 = vmatpush.bf16.xpose.msrb.mxu3 %v492_v53 }
 0x6f7   :  { %484 = vrot.lane.b32.xlu0 %v1386_v0, %s1182_s21  ;;  %v1106_v0 = vld [vmem:[%s1595_s9 + $0x14] sm:$0xf0] }
 0x6f8   :  { %v1004_v2 = vor.u32 %v1106_v0, %v1003_v63 }
 0x6fa   :  { %662 = vmatpush.bf16.msrb.mxu1 %v1004_v2 }
 0x6fe   :  { %663 = vmatpush.bf16.msrb.mxu1 %v996_v6 }
 0x745   :  { %v453_v7 = vpop.xlane.xlu1 %452 }
 0x746   :  { %1155 = vrcp.f32 %v453_v7 }
 0x74c   :  { %v1156_v8 = vpop.eup %1155 }
 0x74d   :  { %v455_v10 = vmul.f32 %v1156_v8, %v1152_v45 }
 0x74f   :  { %v456_v11 = vpack.c.bf16 %v455_v10, %v455_v10 }
 0x751   :  { %973 = vmatmul.msk.bf16.vlgmr.msra.gmra.mxu1 %vm316_vm15, %v456_v11 }
 0x756   :  { %v386_v12 = vpop.xlane.xlu0 %385 }
 0x757   :  { %1157 = vrcp.f32 %v386_v12 }
 0x75d   :  { %v1158_v14 = vpop.eup %1157 }
 0x75e   :  { %v388_v15 = vmul.f32 %v1158_v14, %v1154_v50 }
 0x760   :  { %v389_v17 = vpack.c.bf16 %v388_v15, %v388_v15 }
 0x761   :  { %1025 = vmatmul.msk.bf16.vlgmr.msrb.gmra.mxu1 %vm52_vm0, %v1317_v56 }
 0x762   :  { %971 = vmatmul.msk.bf16.vlgmr.msra.gmra.mxu3 %vm316_vm15, %v389_v17 }
 0x763   :  { %673 = vmatpush.bf16.msra.mxu3 %v1024_v16  ;;  %v1118_v16 = vld [vmem:[%s1597_s11 + $0x38] sm:$0xff] }
 0x767   :  { %674 = vmatpush.bf16.msra.mxu3 %v1016_v21 }
 0x769   :  { %v485_v27 = vpop.permute.xlu0 %484 }
 0x76b   :  { %675 = vmatpush.bf16.msra.mxu3 %v1008_v24  ;;  %v1116_v24 = vld [vmem:[%s1597_s11 + $0x28] sm:$0xff] }
 0x76f   :  { %676 = vmatpush.bf16.msra.mxu3 %v1000_v9  ;;  %v1115_v9 = vld [vmem:[%s1597_s11 + $0x20] sm:$0xff] }
 0x772   :  { %974 = vmatmul.msk.bf16.vlgmr.msrb.gmra.mxu3 %vm197_vm10, %v485_v27 }
 0x782   :  { %1026 = vmatmul.msk.bf16.vlgmr.msra.gmra.mxu3 %vm52_vm0, %v1317_v56 }
 0x7ce   :  { %v474_v28 = vpop.f32.mrf.mxu1 }
 0x7cf   :  { %479 = vrot.lane.b32.xlu2 %v474_v28, %s1174_s2  ;;  %v1114_v28 = vld [vmem:[%s1597_s11 + $0x18] sm:$0xff] }
 0x7d6   :  { %v476_v29 = vpop.f32.mrf.mxu1 }
 0x7d7   :  { %924 = vrot.lane.b32.xlu2 %v1257_v3, %s1171_s27  ;;  %v610_v3 = vld [vmem:[%s1596_s10] sm:$0x3] }
 0x7d8   :  { %v613_v38 = vperm.slane %v610_v3, 1  ;;  %v612_v47 = vperm.slane %v610_v3, 0  ;;  %v1102_v3 = vld [vmem:[%s1599_s7 + $0x18] sm:$0xff] }
 0x7d9   :  { %593 = vmatpush.bf16.msrb.mxu0 %v1102_v3 }
 0x7de   :  { %v665_v30 = vpop.f32.mrf.mxu1 }
 0x7df   :  { %v1505_v48 = vadd.f32 %v665_v30, %v612_v47  ;;  %v1113_v30 = vld [vmem:[%s1597_s11 + $0x10] sm:$0xff] }
 0x7e1   :  { %v684_v49 = vmul.f32 0.70710677, %v1505_v48 }
 0x7e3   :  { %v686_v50 = vand.u32 2147483647, %v684_v49  ;;  %vm752_vm7 = vcmp.ge.f32.partialorder %v684_v49, 0.0 }
 0x7e5   :  { %v410_v31 = vpop.f32.mrf.mxu3  ;;  %v688_v51 = vmul.f32 0.3275911, %v686_v50  ;;  %v740_v10 = vsub.f32 0.0, %v686_v50 }
 0x7e6   :  { %v667_v32 = vpop.f32.mrf.mxu1  ;;  %415 = vrot.lane.b32.xlu1 %v410_v31, %s1173_s4 }
 0x7e7   :  { %v690_v52 = vadd.f32 1.0, %v688_v51  ;;  %v742_v12 = vmul.f32 %v740_v10, %v686_v50  ;;  %v1112_v32 = vld [vmem:[%s1597_s11 + $0x8] sm:$0xff] }
 0x7e8   :  { %v1120_v10 = vld [vmem:[%s1597_s11 + $0x48] sm:$0xff] }
 0x7e9   :  { %v703_v60 = vand.u32 2147483648, %v690_v52  ;;  %vm697_vm4 = vweird.f32 %v690_v52  ;;  %v701_v62 = vand.u32 2147483647, %v690_v52  ;;  %v744_v14 = vmul.f32 1.442695, %v742_v12 }
 0x7eb   :  { %v704_v63 = vor.u32 1.1754944e-38, %v703_v60  ;;  %vm702_vm6 = vcmp.eq.f32.partialorder %v701_v62, 8.507059e+37 }
 0x7ed   :  { %v412_v33 = vpop.f32.mrf.mxu3 }
 0x7f5   :  { %v503_v34 = vpop.f32.mrf.mxu3 }
 0x7f6   :  { %v507_v35 = vmul.f32 0.25, %v503_v34  ;;  %v682_v34 = vmul.f32 0.5, %v1505_v48 }
 0x7f8   :  { %v508_v36 = vsel %vm286_vm14, %v507_v35, -1e+30  ;;  %v1111_v35 = vld [vmem:[%s1597_s11] sm:$0xff] }
 0x7f9   :  { %v509_v56 = vsel %vm316_vm15, %v508_v36, -inf }
 0x7fa   :  { %510 = vmax.xlane.f32.xlu0 %v509_v56 }
 0x7fd   :  { %v505_v37 = vpop.f32.mrf.mxu3 }
 0x805   :  { %v678_v39 = vpop.f32.mrf.mxu3 }
 0x806   :  { %v1500_v40 = vadd.f32 %v678_v39, %v613_v38  ;;  %v1101_v38 = vld [vmem:[%s1599_s7 + $0x10] sm:$0xff] }
 0x807   :  { %594 = vmatpush.bf16.msrb.mxu0 %v1101_v38 }
 0x80d   :  { %v680_v41 = vpop.f32.mrf.mxu3 }
 0x80e   :  { %v1100_v41 = vld [vmem:[%s1599_s7 + $0x8] sm:$0xff] }
 0x80f   :  { %595 = vmatpush.bf16.msrb.mxu0 %v1100_v41 }
 0x829   :  { %v480_v43 = vpop.permute.xlu2 %479 }
 0x858   :  { %v416_v42 = vpop.permute.xlu1 %415 }
 0x859   :  { %419 = vst.msk [vmem:[#allocation2] sm:$0xff] %vm418_vm1, %v416_v42  ;;  %v1099_v42 = vld [vmem:[%s1599_s7] sm:$0xff] }
 0x85a   :  { %483 = vst.msk [vmem:[#allocation2] sm:$0xff] %vm482_vm2, %v480_v43  ;;  %v1126_v43 = vld [vmem:[%s1597_s11 + $0x78] sm:$0xff]  ;;  %596 = vmatpush.bf16.msrb.mxu0 %v1099_v42 }
 0x85e   :  { %909 = vmatpush.bf16.msra.mxu0 %v1126_v43 }
 0x86d   :  { %v511_v61 = vpop.xlane.xlu0 %510 }
 0x86e   :  { %v512_v1 = vsub.f32 %v508_v36, %v511_v61  ;;  %v1125_v61 = vld [vmem:[%s1597_s11 + $0x70] sm:$0xff] }
 0x86f   :  { %910 = vmatpush.bf16.msra.mxu0 %v1125_v61 }
 0x870   :  { %v513_v44 = vmul.f32 1.442695, %v512_v1 }
 0x872   :  { %1159 = vpow2.f32 %v513_v44  ;;  %v685_v44 = vmul.f32 0.70710677, %v1500_v40 }
 0x873   :  { %1161 = vrcp.f32 %v690_v52 }
 0x874   :  { %vm753_vm13 = vcmp.ge.f32.partialorder %v685_v44, 0.0 }
 0x878   :  { %v1160_v45 = vpop.eup %1159 }
 0x879   :  { %v515_v46 = vsel %vm316_vm15, %v1160_v45, 0.0  ;;  %v1162_v53 = vpop.eup %1161 }
 0x87a   :  { %516 = vadd.xlane.f32.xlu0 %v515_v46  ;;  %v693_v54 = vmul.f32 %v1162_v53, %v690_v52  ;;  %vm698_vm3 = vweird.f32 %v1162_v53  ;;  %v687_v46 = vand.u32 2147483647, %v685_v44 }
 0x87b   :  { %vm699_vm5 = vmor %vm697_vm4, %vm698_vm3 }
 0x87c   :  { %v694_v55 = vsub.f32 1.0, %v693_v54  ;;  %v689_v47 = vmul.f32 0.3275911, %v687_v46 }
 0x87e   :  { %v695_v57 = vmul.f32 %v1162_v53, %v694_v55  ;;  %v691_v48 = vadd.f32 1.0, %v689_v47 }
 0x880   :  { %v696_v59 = vadd.f32 %v1162_v53, %v695_v57  ;;  %v718_v54 = vand.u32 2147483648, %v691_v48  ;;  %v716_v55 = vand.u32 2147483647, %v691_v48 }
 0x882   :  { %vm717_vm11 = vcmp.eq.f32.partialorder %v716_v55, 8.507059e+37 }
 0x88e   :  { %521 = vrot.lane.b32.xlu0 %v1407_v20, %s1182_s21  ;;  %v700_v20 = vsel %vm699_vm5, %v1162_v53, %v696_v59  ;;  %v719_v59 = vor.u32 1.1754944e-38, %v718_v54 }
 0x88f   :  { %v705_v0 = vsel %vm702_vm6, %v704_v63, %v700_v20  ;;  %v1124_v20 = vld [vmem:[%s1597_s11 + $0x68] sm:$0xff] }
 0x890   :  { %v722_v2 = vmul.f32 1.0614054, %v705_v0  ;;  %911 = vmatpush.bf16.msra.mxu0 %v1124_v20 }
 0x892   :  { %v724_v4 = vadd.f32 -1.4531521, %v722_v2 }
 0x894   :  { %v726_v5 = vmul.f32 %v724_v4, %v705_v0 }
 0x896   :  { %v728_v6 = vadd.f32 1.4214138, %v726_v5  ;;  %v1122_v5 = vld [vmem:[%s1597_s11 + $0x58] sm:$0xff] }
 0x898   :  { %v730_v8 = vmul.f32 %v728_v6, %v705_v0  ;;  %v1121_v6 = vld [vmem:[%s1597_s11 + $0x50] sm:$0xff] }
 0x89a   :  { %v732_v11 = vadd.f32 -0.28449672, %v730_v8  ;;  %v741_v8 = vsub.f32 0.0, %v687_v46 }
 0x89c   :  { %v734_v58 = vmul.f32 %v732_v11, %v705_v0  ;;  %v743_v12 = vmul.f32 %v741_v8, %v687_v46 }
 0x89e   :  { %v736_v18 = vadd.f32 0.2548296, %v734_v58 }
 0x8a0   :  { %v738_v23 = vmul.f32 %v736_v18, %v705_v0  ;;  %v1123_v0 = vld [vmem:[%s1597_s11 + $0x60] sm:$0xff] }
 0x8a1   :  { %912 = vmatpush.bf16.msra.mxu0 %v1123_v0 }
 0x8a5   :  { %913 = vmatpush.bf16.msra.mxu0 %v1122_v5 }
 0x8a9   :  { %914 = vmatpush.bf16.msra.mxu0 %v1121_v6 }
 0x8ad   :  { %915 = vmatpush.bf16.msra.mxu0 %v1120_v10 }
 0x8ed   :  { %v517_v7 = vpop.xlane.xlu0 %516 }
 0x8ee   :  { %1163 = vrcp.f32 %v517_v7 }
 0x8ef   :  { %1165 = vpow2.f32 %v744_v14  ;;  %v746_v14 = vmul.f32 1.442695, %v743_v12 }
 0x8f0   :  { %1167 = vrcp.f32 %v691_v48 }
 0x8f1   :  { %1169 = vpow2.f32 %v746_v14 }
 0x8f4   :  { %v1164_v13 = vpop.eup %1163 }
 0x8f5   :  { %v519_v15 = vmul.f32 %v1164_v13, %v1160_v45  ;;  %v1166_v25 = vpop.eup %1165  ;;  %v1119_v13 = vld [vmem:[%s1597_s11 + $0x40] sm:$0xff] }
 0x8f6   :  { %v748_v26 = vmul.f32 %v1166_v25, %v738_v23  ;;  %v1168_v49 = vpop.eup %1167  ;;  %916 = vmatpush.bf16.msra.mxu0 %v1119_v13 }
 0x8f7   :  { %v520_v21 = vpack.c.bf16 %v519_v15, %v519_v15  ;;  %v708_v50 = vmul.f32 %v1168_v49, %v691_v48  ;;  %vm713_vm8 = vweird.f32 %v1168_v49  ;;  %v1170_v18 = vpop.eup %1169 }
 0x8f8   :  { %v750_v27 = vsub.f32 1.0, %v748_v26 }
 0x8f9   :  { %v709_v51 = vsub.f32 1.0, %v708_v50 }
 0x8fa   :  { %v754_v29 = vsub.f32 0.0, %v750_v27 }
 0x8fb   :  { %v710_v52 = vmul.f32 %v1168_v49, %v709_v51 }
 0x8fc   :  { %v756_v31 = vsel %vm752_vm7, %v750_v27, %v754_v29 }
 0x8fd   :  { %v758_v33 = vadd.f32 1.0, %v756_v31  ;;  %v711_v53 = vadd.f32 %v1168_v49, %v710_v52  ;;  %v1141_v31 = vld [vmem:[%s1598_s12] ss:$0 sm:$0xff] }
 0x8ff   :  { %v760_v36 = vmul.f32 %v758_v33, %v682_v34 }
 0x900   :  { %v522_v17 = vpop.permute.xlu0 %521 }
 0x901   :  { %v527_v19 = vsel %vm332_vm9, %v522_v17, 0  ;;  %v762_v56 = vpack.c.bf16 %v760_v36, %v760_v36  ;;  %vm712_vm9 = vweird.f32 %v691_v48 }
 0x902   :  { %536 = vmatpush.bf16.msrb.mxu2 %v527_v19  ;;  %vm714_vm10 = vmor %vm712_vm9, %vm713_vm8 }
 0x903   :  { %v715_v57 = vsel %vm714_vm10, %v1168_v49, %v711_v53 }
 0x904   :  { %v720_v60 = vsel %vm717_vm11, %v719_v59, %v715_v57 }
 0x905   :  { %975 = vmatmul.msk.bf16.vlgmr.msrb.gmra.mxu2 %vm316_vm15, %v520_v21  ;;  %v723_v62 = vmul.f32 1.0614054, %v720_v60 }
 0x906   :  { %896 = vmatpush.bf16.msra.mxu2 %v1118_v16 }
 0x907   :  { %v725_v63 = vadd.f32 -1.4531521, %v723_v62 }
 0x909   :  { %v727_v2 = vmul.f32 %v725_v63, %v720_v60 }
 0x90a   :  { %897 = vmatpush.bf16.msra.mxu2 %v1117_v22 }
 0x90b   :  { %v729_v4 = vadd.f32 1.4214138, %v727_v2 }
 0x90d   :  { %v731_v7 = vmul.f32 %v729_v4, %v720_v60 }
 0x90e   :  { %898 = vmatpush.bf16.msra.mxu2 %v1116_v24 }
 0x90f   :  { %v733_v11 = vadd.f32 -0.28449672, %v731_v7 }
 0x911   :  { %v735_v58 = vmul.f32 %v733_v11, %v720_v60 }
 0x912   :  { %899 = vmatpush.bf16.msra.mxu2 %v1115_v9  ;;  %v683_v9 = vmul.f32 0.5, %v1500_v40  ;;  %v925_v40 = vpop.permute.xlu2 %924 }
 0x913   :  { %v737_v15 = vadd.f32 0.2548296, %v735_v58 }
 0x915   :  { %v739_v16 = vmul.f32 %v737_v15, %v720_v60 }
 0x916   :  { %900 = vmatpush.bf16.msra.mxu2 %v1114_v28 }
 0x917   :  { %v749_v19 = vmul.f32 %v1170_v18, %v739_v16 }
 0x919   :  { %v751_v21 = vsub.f32 1.0, %v749_v19 }
 0x91a   :  { %901 = vmatpush.bf16.msra.mxu2 %v1113_v30 }
 0x91b   :  { %v755_v24 = vsub.f32 0.0, %v751_v21 }
 0x91d   :  { %v757_v25 = vsel %vm753_vm13, %v751_v21, %v755_v24 }
 0x91e   :  { %902 = vmatpush.bf16.msra.mxu2 %v1112_v32  ;;  %v759_v26 = vadd.f32 1.0, %v757_v25  ;;  %v1142_v32 = vld [vmem:[%s1600_s8] ss:$0 sm:$0xff] }
 0x920   :  { %v761_v27 = vmul.f32 %v759_v26, %v683_v9 }
 0x922   :  { %903 = vmatpush.bf16.msra.mxu2 %v1111_v35  ;;  %v763_v28 = vpack.c.bf16 %v761_v27, %v761_v27 }
 0x925   :  { %904 = vmatmul.bf16.vlgmr.msra.gmra.mxu2 %v762_v56 }
 0x988   :  { %v538_v37 = vpop.f32.mrf.mxu2 }
 0x989   :  { %543 = vrot.lane.b32.xlu0 %v538_v37, %s1175_s6 }
 0x990   :  { %v540_v39 = vpop.f32.mrf.mxu2 }
 0x9a8   :  { %v1554_v1 = vpop.f32.mrf.mxu2 }
 0x9a9   :  { %v906_v33 = vadd.f32 %v1141_v31, %v1554_v1 }
 0x9b0   :  { %v907_v45 = vpop.f32.mrf.mxu2 }
 0x9fb   :  { %v544_v17 = vpop.permute.xlu0 %543 }
 0x9fc   :  { %547 = vst.msk [vmem:[#allocation2] sm:$0xff] %vm546_vm12, %v544_v17 }
 0xa03   :  { %v548_v22 = vld [vmem:[#allocation2] sm:$0xff] }
 0xa04   :  { %v549_v23 = vpack.c.bf16 %v548_v22, %v548_v22 }
 0xa06   :  { %992 = vmatmul.msk.bf16.vlgmr.msrb.gmra.mxu0 %vm52_vm0, %v549_v23 }
 0xa16   :  { %917 = vmatmul.bf16.vlgmr.msra.gmra.mxu0 %v763_v28 }
 0xa83   :  { %v598_v29 = vpop.f32.mrf.mxu0 }
 0xa84   :  { %v599_v35 = vadd.f32 %v1142_v32, %v598_v29 }
 0xa8b   :  { %v600_v30 = vpop.f32.mrf.mxu0 }
 0xa93   :  { %v918_v34 = vpop.f32.mrf.mxu0 }
 0xa94   :  { %v919_v36 = vadd.f32 %v918_v34, %v906_v33 }
 0xa96   :  { %v922_v56 = vadd.f32 %v919_v36, %v599_v35 }
 0xa98   :  { %v927_v37 = vsel %vm52_vm0, %v922_v56, %v925_v40 }
 0xa99   :  { %v928_v3 = vpack.c.bf16 %v927_v37, %v927_v37 }
 0xa9b   :  { %929 = vst [vmem:[%s1601_s13] sm:$0xf] %v928_v3  ;;  %v920_v38 = vpop.f32.mrf.mxu0 }

// kernel: forward.3
= control target key start
LH: loop header
LB: loop body
LE: loop exit
PB: predicated region body
PF: predicated region fallthrough
CT: control target
= control target key end

     0   :  { %vm47_vm0 = vcmask 523264   ;;  %v1166_v3 = vmov 64.0   ;;  %v173_v56 = vlaneseq  ;;  %s1168_s28 = smov 32   ;;  %vm327_vm9 = vcmask 1043456   ;;  %s1172_s14 = smov 60   ;;  %s1573_s0 = inlined_call_operand.vmem [shape: bf16[8,64], index: 0, kind: input, shape index: {}]   ;;  %s1574_s3 = inlined_call_operand.vmem [shape: f32[1,64], index: 3, kind: input, shape index: {}]   ;;  %s1575_s4 = inlined_call_operand.vmem [shape: f32[1,64], index: 4, kind: input, shape index: {}]   ;;  %s1576_s5 = inlined_call_operand.vmem [shape: bf16[64,192], index: 5, kind: input, shape index: {}]   ;;  %s1577_s2 = inlined_call_operand.vmem [shape: f32[8,16], index: 2, kind: input, shape index: {}]   ;;  %s1578_s6 = inlined_call_operand.vmem [shape: f32[1,192], index: 6, kind: input, shape index: {}]   ;;  %s1579_s1 = inlined_call_operand.vmem [shape: f32[8,16], index: 1, kind: input, shape index: {}]   ;;  %s1580_s9 = inlined_call_operand.vmem [shape: bf16[64,256], index: 9, kind: input, shape index: {}]   ;;  %s1581_s11 = inlined_call_operand.vmem [shape: bf16[256,64], index: 11, kind: input, shape index: {}]   ;;  %s1582_s10 = inlined_call_operand.vmem [shape: f32[1,256], index: 10, kind: input, shape index: {}]   ;;  %s1583_s12 = inlined_call_operand.vmem [shape: f32[1,64], index: 12, kind: input, shape index: {}]   ;;  %s1584_s8 = inlined_call_operand.vmem [shape: f32[1,64], index: 8, kind: input, shape index: {}]   ;;  %s1585_s7 = inlined_call_operand.vmem [shape: bf16[64,64], index: 7, kind: input, shape index: {}]   ;;  %s1586_s13 = inlined_call_operand.vmem [shape: bf16[8,128], index: 13, kind: output, shape index: {}]  }
   0x1   :  { %v45_v0 = vld [vmem:[%s1573_s0] sm:$0xf]  ;;  %1138 = vrcp.f32 %v1166_v3  ;;  %v955_v15 = vld [vmem:[%s1576_s5 + $0x30] sm:$0xf]  ;;  %v1093_v16 = vld [vmem:[%s1576_s5 + $0x34] sm:$0xf0] }
   0x2   :  { %v1251_v1 = vunpack.c.l.bf16 %v45_v0  ;;  %v956_v17 = vor.u32 %v1093_v16, %v955_v15  ;;  %v947_v18 = vld [vmem:[%s1576_s5 + $0x20] sm:$0xf]  ;;  %v1091_v19 = vld [vmem:[%s1576_s5 + $0x24] sm:$0xf0]  ;;  %v939_v21 = vld [vmem:[%s1576_s5 + $0x10] sm:$0xf] }
   0x3   :  { %v948_v20 = vor.u32 %v1091_v19, %v947_v18  ;;  %v1089_v22 = vld [vmem:[%s1576_s5 + $0x14] sm:$0xf0]  ;;  %v931_v24 = vld [vmem:[%s1576_s5] sm:$0xf]  ;;  %v1087_v25 = vld [vmem:[%s1576_s5 + $0x4] sm:$0xf0] }
   0x4   :  { %v48_v2 = vsel %vm47_vm0, %v1251_v1, 0.0  ;;  %149 = vmatpush.bf16.msra.mxu1 %v956_v17  ;;  %v940_v23 = vor.u32 %v1089_v22, %v939_v21  ;;  %v932_v26 = vor.u32 %v1087_v25, %v931_v24  ;;  %v1092_v27 = vld [vmem:[%s1576_s5 + $0x34] sm:$0xf]  ;;  %v957_v28 = vld [vmem:[%s1576_s5 + $0x38] sm:$0xf0]  ;;  %v172_v55 = vld [vmem:[%s1577_s2] sm:$0xff] }
   0x5   :  { %49 = vadd.xlane.f32.xlu0 %v48_v2  ;;  %v960_v29 = vor.u32 %v1092_v27, %v957_v28  ;;  %v1090_v30 = vld [vmem:[%s1576_s5 + $0x24] sm:$0xf]  ;;  %v949_v31 = vld [vmem:[%s1576_s5 + $0x28] sm:$0xf0]  ;;  %v1088_v35 = vld [vmem:[%s1576_s5 + $0x14] sm:$0xf] }
   0x6   :  { %v952_v33 = vor.u32 %v1090_v30, %v949_v31  ;;  %v941_v36 = vld [vmem:[%s1576_s5 + $0x18] sm:$0xf0]  ;;  %v1086_v39 = vld [vmem:[%s1576_s5 + $0x4] sm:$0xf]  ;;  %v933_v40 = vld [vmem:[%s1576_s5 + $0x8] sm:$0xf0] }
   0x7   :  { %v1139_v4 = vpop.eup %1138  ;;  %v944_v38 = vor.u32 %v1088_v35, %v941_v36  ;;  %v936_v41 = vor.u32 %v1086_v39, %v933_v40  ;;  %v1134_v48 = vld [vmem:[%s1574_s3] ss:$0 sm:$0xff]  ;;  %v176_v57 = vsub.f32 0.0, %v172_v55  ;;  %v1324_v59 = vand.u32 127, %v173_v56  ;;  %s1169_s2 = smov 64   ;;  %s1173_s15 = smov 68  }
   0x8   :  { %v52_v5 = vmul.f32 64.0, %v1139_v4  ;;  %vm56_vm1 = vweird.f32 %v1139_v4  ;;  %150 = vmatpush.bf16.msra.mxu1 %v948_v20  ;;  %v1135_v51 = vld [vmem:[%s1575_s4] ss:$0 sm:$0xff]  ;;  %s1167_s4 = smov 48   ;;  %vm192_vm10 = vcmask 130048   ;;  %vm194_vm11 = vcmask 261120  }
   0x9   :  { %v96_v58 = vld [vmem:[%s1578_s6] sm:$0x3]  ;;  %vm175_vm5 = vcmp.lt.s32.totalorder %v1324_v59, 4  ;;  %vm178_vm6 = vcmp.ge.s32.totalorder %v1324_v59, 4  ;;  %vm179_vm7 = vcmp.lt.s32.totalorder %v1324_v59, 8  ;;  %s1170_s6 = smov 16  }
   0xa   :  { %v53_v6 = vsub.f32 1.0, %v52_v5  ;;  %v98_v60 = vperm.slane %v96_v58, 0  ;;  %v177_v61 = vsel %vm175_vm5, %v176_v57, 0.0  ;;  %v99_v2 = vperm.slane %v96_v58, 1  ;;  %vm180_vm8 = vmand %vm178_vm6, %vm179_vm7  ;;  %s1174_s16 = smov 124   ;;  %s1175_s17 = smov 112  }
   0xb   :  { %202 = vrot.lane.b32.xlu2 %v177_v61, %s1168_s28  ;;  %vm196_vm12 = vcmask 392192   ;;  %vm224_vm13 = vcmask 1048064   ;;  %vm311_vm15 = vcmask 64512   ;;  %s1176_s18 = smov 96   ;;  %s1177_s19 = smov 80   ;;  %vm477_vm7 = vcmask 392448  }
   0xc   :  { %v54_v7 = vmul.f32 %v1139_v4, %v53_v6  ;;  %151 = vmatpush.bf16.msra.mxu1 %v940_v23 }
   0xe   :  { %v55_v8 = vadd.f32 %v1139_v4, %v54_v7 }
  0x10   :  { %v57_v9 = vsel %vm56_vm1, %v1139_v4, %v55_v8  ;;  %152 = vmatpush.bf16.msra.mxu1 %v932_v26  ;;  %v181_v4 = vsel %vm180_vm8, %v172_v55, 0.0  ;;  %vm413_vm1 = vcmask 261248  }
  0x14   :  { %162 = vmatpush.bf16.msrb.mxu1 %v960_v29 }
  0x18   :  { %163 = vmatpush.bf16.msrb.mxu1 %v952_v33 }
  0x1c   :  { %164 = vmatpush.bf16.msrb.mxu1 %v944_v38 }
  0x20   :  { %165 = vmatpush.bf16.msrb.mxu1 %v936_v41 }
  0x78   :  { %v50_v10 = vpop.xlane.xlu0 %49 }
  0x79   :  { %v58_v11 = vmul.f32 %v57_v9, %v50_v10 }
  0x7b   :  { %v59_v12 = vsub.f32 %v1251_v1, %v58_v11  ;;  %v203_v11 = vpop.permute.xlu2 %202 }
  0x7d   :  { %v60_v13 = vmul.f32 %v59_v12, %v59_v12 }
  0x7f   :  { %v61_v14 = vsel %vm47_vm0, %v60_v13, 0.0 }
  0x80   :  { %62 = vadd.xlane.f32.xlu0 %v61_v14 }
  0x94   :  { %205 = vrot.lane.b32.xlu0 %v177_v61, %s1167_s4 }
  0xf3   :  { %v63_v32 = vpop.xlane.xlu0 %62 }
  0xf4   :  { %v64_v34 = vmul.f32 %v63_v32, %v57_v9  ;;  %v171_v9 = vld [vmem:[%s1579_s1] sm:$0xff]  ;;  %s1171_s1 = smov 4  }
  0xf6   :  { %v65_v37 = vadd.f32 1e-05, %v64_v34 }
  0xf8   :  { %1140 = vrsqrt.f32 %v65_v37  ;;  %vm72_vm3 = vweird.f32 %v65_v37 }
  0xfe   :  { %v1141_v42 = vpop.eup %1140 }
  0xff   :  { %v67_v43 = vmul.f32 %v1141_v42, %v65_v37  ;;  %vm73_vm2 = vweird.f32 %v1141_v42 }
 0x100   :  { %vm74_vm4 = vmor %vm72_vm3, %vm73_vm2 }
 0x101   :  { %v68_v44 = vmul.f32 %v1141_v42, %v67_v43 }
 0x103   :  { %v69_v45 = vmul.f32 0.5, %v68_v44 }
 0x105   :  { %v70_v46 = vsub.f32 1.5, %v69_v45 }
 0x106   :  { %v206_v13 = vpop.permute.xlu0 %205 }
 0x107   :  { %v71_v47 = vmul.f32 %v1141_v42, %v70_v46 }
 0x109   :  { %v75_v49 = vsel %vm74_vm4, %v1141_v42, %v71_v47 }
 0x10a   :  { %v76_v50 = vmul.f32 %v75_v49, %v59_v12 }
 0x10c   :  { %v81_v52 = vmul.f32 %v1134_v48, %v76_v50 }
 0x10e   :  { %v86_v53 = vadd.f32 %v1135_v51, %v81_v52 }
 0x110   :  { %v1311_v54 = vpack.c.bf16 %v86_v53, %v86_v53 }
 0x112   :  { %961 = vmatmul.msk.bf16.vlgmr.msra.gmra.mxu1 %vm47_vm0, %v1311_v54 }
 0x122   :  { %962 = vmatmul.msk.bf16.vlgmr.msrb.gmra.mxu1 %vm47_vm0, %v1311_v54 }
 0x18f   :  { %v154_v62 = vpop.f32.mrf.mxu1 }
 0x190   :  { %v1329_v63 = vadd.f32 %v154_v62, %v98_v60 }
 0x192   :  { %253 = vrot.lane.b32.xlu1 %v1329_v63, %s1169_s2 }
 0x197   :  { %v156_v0 = vpop.f32.mrf.mxu1 }
 0x19a   :  { %199 = vrot.lane.b32.xlu1 %v177_v61, %s1170_s6 }
 0x19f   :  { %v167_v3 = vpop.f32.mrf.mxu1 }
 0x1a0   :  { %v168_v5 = vadd.f32 %v167_v3, %v99_v2 }
 0x1a2   :  { %v1336_v6 = vpack.c.bf16 %v168_v5, %v168_v5  ;;  %212 = vrot.lane.b32.xlu1 %v181_v4, %s1170_s6  ;;  %v1378_v5 = vshrl.u32 %v173_v56, 7 }
 0x1a4   :  { %v329_v7 = vsel %vm327_vm9, %v1336_v6, 0  ;;  %vm281_vm14 = vcmp.le.s32.totalorder %v1324_v59, %v1378_v5  ;;  %v1006_v5 = vld [vmem:[%s1580_s9 + $0x20] sm:$0xf] }
 0x1a5   :  { %338 = vmatpush.bf16.msra.mxu3 %v329_v7 }
 0x1a7   :  { %v169_v8 = vpop.f32.mrf.mxu1 }
 0x1aa   :  { %218 = vrot.lane.b32.xlu1 %v181_v4, %s1167_s4 }
 0x1b2   :  { %186 = vrot.lane.b32.xlu1 %v171_v9, %s1168_s28 }
 0x204   :  { %v254_v10 = vpop.permute.xlu1 %253 }
 0x205   :  { %256 = vrot.lane.b32.xlu2 %v254_v10, %s1169_s2 }
 0x20c   :  { %v200_v12 = vpop.permute.xlu1 %199 }
 0x20d   :  { %215 = vrot.lane.b32.xlu2 %v181_v4, %s1168_s28  ;;  %v208_v14 = vsel %vm192_vm10, %v177_v61, %v200_v12 }
 0x20e   :  { %v209_v15 = vsel %vm194_vm11, %v208_v14, %v203_v11 }
 0x20f   :  { %v210_v16 = vsel %vm196_vm12, %v209_v15, %v206_v13 }
 0x210   :  { %233 = vrot.lane.b32.xlu1 %v210_v16, %s1171_s1 }
 0x214   :  { %v213_v17 = vpop.permute.xlu1 %212 }
 0x215   :  { %183 = vrot.lane.b32.xlu2 %v171_v9, %s1170_s6  ;;  %v221_v20 = vsel %vm192_vm10, %v181_v4, %v213_v17  ;;  %v386_v17 = vunpack.c.l.b16 %v1336_v6 }
 0x21c   :  { %v219_v23 = vpop.permute.xlu1 %218 }
 0x21d   :  { %189 = vrot.lane.b32.xlu2 %v171_v9, %s1167_s4 }
 0x224   :  { %v187_v27 = vpop.permute.xlu1 %186 }
 0x25f   :  { %v257_v18 = vpop.permute.xlu2 %256 }
 0x260   :  { %v258_v19 = vsel %vm224_vm13, %v257_v18, %v254_v10  ;;  %v1390_v18 = vpack.c.b16 %v386_v17, %v386_v17 }
 0x261   :  { %259 = vrot.lane.b32.xlu0 %v258_v19, %s1169_s2 }
 0x267   :  { %v216_v21 = vpop.permute.xlu2 %215 }
 0x268   :  { %v222_v22 = vsel %vm194_vm11, %v221_v20, %v216_v21 }
 0x269   :  { %225 = vrot.lane.b32.xlu0 %v1329_v63, %s1169_s2  ;;  %v223_v24 = vsel %vm196_vm12, %v222_v22, %v219_v23 }
 0x26a   :  { %243 = vrot.lane.b32.xlu2 %v223_v24, %s1172_s14 }
 0x26f   :  { %v184_v25 = vpop.permute.xlu2 %183 }
 0x270   :  { %v193_v26 = vsel %vm192_vm10, %v171_v9, %v184_v25 }
 0x271   :  { %v195_v28 = vsel %vm194_vm11, %v193_v26, %v187_v27 }
 0x277   :  { %v190_v29 = vpop.permute.xlu2 %189 }
 0x278   :  { %v197_v30 = vsel %vm196_vm12, %v195_v28, %v190_v29  ;;  %vm541_vm12 = vcmask 523648  }
 0x279   :  { %263 = vrot.lane.b32.xlu1 %v197_v30, %s1169_s2  ;;  %v231_v55 = vmul.f32 %v197_v30, %v1329_v63 }
 0x282   :  { %v234_v33 = vpop.permute.xlu1 %233 }
 0x2c4   :  { %v244_v31 = vpop.permute.xlu2 %243 }
 0x2d3   :  { %v260_v32 = vpop.permute.xlu0 %259 }
 0x2d4   :  { %v261_v34 = vsel %vm224_vm13, %v260_v32, %v254_v10 }
 0x2d5   :  { %v267_v35 = vmul.f32 %v261_v34, %v234_v33  ;;  %v273_v36 = vmul.f32 %v261_v34, %v244_v31 }
 0x2d7   :  { %275 = vrot.lane.b32.xlu0 %v273_v36, %s1171_s1  ;;  %269 = vrot.lane.b32.xlu2 %v267_v35, %s1172_s14 }
 0x2db   :  { %v226_v37 = vpop.permute.xlu0 %225 }
 0x2dc   :  { %v227_v38 = vsel %vm224_vm13, %v226_v37, %v1329_v63 }
 0x2dd   :  { %228 = vrot.lane.b32.xlu1 %v227_v38, %s1169_s2 }
 0x2eb   :  { %v264_v39 = vpop.permute.xlu1 %263 }
 0x2ec   :  { %v266_v41 = vmul.f32 %v264_v39, %v1329_v63 }
 0x331   :  { %v270_v40 = vpop.permute.xlu2 %269 }
 0x332   :  { %v272_v42 = vadd.f32 %v270_v40, %v266_v41  ;;  %v1104_v41 = vld [vmem:[%s1580_s9 + $0x34] sm:$0xf] }
 0x349   :  { %v276_v43 = vpop.permute.xlu0 %275 }
 0x34a   :  { %v278_v44 = vadd.f32 %v276_v43, %v272_v42  ;;  %v1016_v42 = vld [vmem:[%s1580_s9 + $0x38] sm:$0xf0] }
 0x34c   :  { %v283_v45 = vpack.c.bf16 %v278_v44, %v278_v44 }
 0x34e   :  { %v286_v46 = vunpack.c.l.b16 %v283_v45  ;;  %v1019_v45 = vor.u32 %v1104_v41, %v1016_v42 }
 0x34f   :  { %v229_v47 = vpop.permute.xlu1 %228 }
 0x350   :  { %v287_v48 = vpack.c.b16 %v286_v46, %v286_v46  ;;  %v230_v49 = vsel %vm224_vm13, %v229_v47, %v1329_v63  ;;  %v1102_v47 = vld [vmem:[%s1580_s9 + $0x24] sm:$0xf] }
 0x351   :  { %v236_v50 = vmul.f32 %v234_v33, %v230_v49  ;;  %v246_v51 = vmul.f32 %v244_v31, %v230_v49 }
 0x352   :  { %288 = vrot.lane.b32.xlu2 %v287_v48, %s1169_s2 }
 0x353   :  { %248 = vrot.lane.b32.xlu1 %v246_v51, %s1173_s15  ;;  %238 = vrot.lane.b32.xlu0 %v236_v50, %s1174_s16  ;;  %v1100_v50 = vld [vmem:[%s1580_s9 + $0x14] sm:$0xf]  ;;  %v1000_v51 = vld [vmem:[%s1580_s9 + $0x18] sm:$0xf0] }
 0x35b   :  { %350 = vrot.lane.b32.xlu1 %v287_v48, %s1167_s4 }
 0x3ac   :  { %v289_v52 = vpop.permute.xlu2 %288 }
 0x3ad   :  { %v294_v53 = vsel %vm192_vm10, %v289_v52, 0  ;;  %v1003_v52 = vor.u32 %v1100_v50, %v1000_v51 }
 0x3ae   :  { %303 = vmatpush.bf16.xpose.msra.mxu2 %v294_v53  ;;  %v1098_v53 = vld [vmem:[%s1580_s9 + $0x4] sm:$0xf] }
 0x3c5   :  { %v249_v57 = vpop.permute.xlu1 %248  ;;  %v239_v58 = vpop.permute.xlu0 %238 }
 0x3c6   :  { %v241_v60 = vadd.f32 %v239_v58, %v231_v55  ;;  %v992_v55 = vld [vmem:[%s1580_s9 + $0x8] sm:$0xf0] }
 0x3c8   :  { %v251_v61 = vadd.f32 %v249_v57, %v241_v60  ;;  %v995_v57 = vor.u32 %v1098_v53, %v992_v55 }
 0x3ca   :  { %v282_v62 = vpack.c.bf16 %v251_v61, %v251_v61 }
 0x3cc   :  { %963 = vmatmul.msk.bf16.vlgmr.msra.gmra.mxu2 %vm192_vm10, %v282_v62  ;;  %v346_v0 = vunpack.c.l.b16 %v282_v62 }
 0x3cd   :  { %v351_v2 = vpop.permute.xlu1 %350 }
 0x3ce   :  { %v356_v3 = vsel %vm192_vm10, %v351_v2, 0  ;;  %v347_v4 = vpack.c.b16 %v346_v0, %v346_v0 }
 0x3cf   :  { %365 = vmatpush.bf16.xpose.msrb.mxu3 %v356_v3 }
 0x3d0   :  { %348 = vrot.lane.b32.xlu1 %v347_v4, %s1175_s17 }
 0x442   :  { %v349_v25 = vpop.permute.xlu1 %348 }
 0x44f   :  { %v305_v7 = vpop.f32.mrf.mxu2 }
 0x450   :  { %v309_v63 = vmul.f32 0.25, %v305_v7 }
 0x452   :  { %v310_v8 = vsel %vm281_vm14, %v309_v63, -1e+30 }
 0x453   :  { %v312_v9 = vsel %vm311_vm15, %v310_v8, -inf }
 0x454   :  { %313 = vmax.xlane.f32.xlu2 %v312_v9 }
 0x457   :  { %v307_v10 = vpop.f32.mrf.mxu2 }
 0x46c   :  { %417 = vrot.lane.b32.xlu2 %v287_v48, %s1168_s28 }
 0x4c7   :  { %v314_v11 = vpop.xlane.xlu2 %313 }
 0x4c8   :  { %v315_v12 = vsub.f32 %v310_v8, %v314_v11 }
 0x4ca   :  { %v316_v56 = vmul.f32 1.442695, %v315_v12 }
 0x4cc   :  { %1142 = vpow2.f32 %v316_v56 }
 0x4cf   :  { %v418_v13 = vpop.permute.xlu2 %417 }
 0x4d0   :  { %v423_v14 = vsel %vm192_vm10, %v418_v13, 0 }
 0x4d1   :  { %432 = vmatpush.bf16.xpose.msra.mxu0 %v423_v14 }
 0x4d2   :  { %v1143_v15 = vpop.eup %1142 }
 0x4d3   :  { %v318_v16 = vsel %vm311_vm15, %v1143_v15, 0.0 }
 0x4d4   :  { %319 = vadd.xlane.f32.xlu0 %v318_v16 }
 0x4e8   :  { %388 = vrot.lane.b32.xlu0 %v1390_v18, %s1175_s17 }
 0x4f0   :  { %481 = vrot.lane.b32.xlu0 %v287_v48, %s1170_s6  ;;  %v1008_v48 = vld [vmem:[%s1580_s9 + $0x28] sm:$0xf0] }
 0x4f1   :  { %v1011_v49 = vor.u32 %v1102_v47, %v1008_v48  ;;  %v1112_v48 = vld [vmem:[%s1581_s11 + $0x30] sm:$0xff] }
 0x547   :  { %v320_v19 = vpop.xlane.xlu0 %319 }
 0x548   :  { %1144 = vrcp.f32 %v320_v19 }
 0x54e   :  { %v1145_v20 = vpop.eup %1144 }
 0x54f   :  { %v322_v21 = vmul.f32 %v1145_v20, %v1143_v15  ;;  %v1014_v20 = vld [vmem:[%s1580_s9 + $0x30] sm:$0xf] }
 0x551   :  { %v323_v22 = vpack.c.bf16 %v322_v21, %v322_v21  ;;  %v1105_v21 = vld [vmem:[%s1580_s9 + $0x34] sm:$0xf0] }
 0x552   :  { %v1015_v59 = vor.u32 %v1105_v21, %v1014_v20 }
 0x553   :  { %964 = vmatmul.msk.bf16.vlgmr.msra.gmra.mxu3 %vm311_vm15, %v323_v22  ;;  %v1103_v22 = vld [vmem:[%s1580_s9 + $0x24] sm:$0xf0] }
 0x55a   :  { %v389_v23 = vpop.permute.xlu0 %388 }
 0x55b   :  { %v394_v24 = vsel %vm327_vm9, %v389_v23, 0  ;;  %v1007_v23 = vor.u32 %v1103_v22, %v1006_v5 }
 0x55c   :  { %403 = vmatpush.bf16.msra.mxu3 %v394_v24  ;;  %v998_v24 = vld [vmem:[%s1580_s9 + $0x10] sm:$0xf] }
 0x562   :  { %v482_v26 = vpop.permute.xlu0 %481 }
 0x563   :  { %v487_v6 = vsel %vm192_vm10, %v482_v26, 0  ;;  %965 = vmatmul.msk.bf16.vlgmr.msrb.gmra.mxu3 %vm192_vm10, %v349_v25  ;;  %v1101_v25 = vld [vmem:[%s1580_s9 + $0x14] sm:$0xf0] }
 0x564   :  { %496 = vmatpush.bf16.xpose.msrb.mxu3 %v487_v6  ;;  %v999_v26 = vor.u32 %v1101_v25, %v998_v24  ;;  %v990_v6 = vld [vmem:[%s1580_s9] sm:$0xf] }
 0x5d6   :  { %v340_v27 = vpop.f32.mrf.mxu3 }
 0x5d7   :  { %344 = vst.msk [vmem:[#allocation2] sm:$0xff] %vm192_vm10, %v340_v27  ;;  %v1099_v27 = vld [vmem:[%s1580_s9 + $0x4] sm:$0xf0] }
 0x5de   :  { %v342_v28 = vpop.f32.mrf.mxu3 }
 0x5df   :  { %v991_v28 = vor.u32 %v1099_v27, %v990_v6 }
 0x5e6   :  { %v367_v29 = vpop.f32.mrf.mxu3 }
 0x5e7   :  { %v371_v30 = vmul.f32 0.25, %v367_v29 }
 0x5e9   :  { %v372_v31 = vsel %vm281_vm14, %v371_v30, -1e+30 }
 0x5ea   :  { %v373_v32 = vsel %vm311_vm15, %v372_v31, -inf }
 0x5eb   :  { %374 = vmax.xlane.f32.xlu1 %v373_v32 }
 0x5ee   :  { %v369_v33 = vpop.f32.mrf.mxu3 }
 0x604   :  { %415 = vrot.lane.b32.xlu1 %v347_v4, %s1176_s18 }
 0x65e   :  { %v375_v34 = vpop.xlane.xlu1 %374 }
 0x65f   :  { %v376_v35 = vsub.f32 %v372_v31, %v375_v34 }
 0x661   :  { %v377_v36 = vmul.f32 1.442695, %v376_v35 }
 0x663   :  { %1146 = vpow2.f32 %v377_v36 }
 0x669   :  { %v1147_v37 = vpop.eup %1146 }
 0x66a   :  { %v379_v38 = vsel %vm311_vm15, %v1147_v37, 0.0 }
 0x66b   :  { %380 = vadd.xlane.f32.xlu2 %v379_v38 }
 0x676   :  { %v416_v39 = vpop.permute.xlu1 %415 }
 0x677   :  { %967 = vmatmul.msk.bf16.vlgmr.msra.gmra.mxu0 %vm192_vm10, %v416_v39 }
 0x683   :  { %479 = vrot.lane.b32.xlu2 %v347_v4, %s1177_s19 }
 0x6de   :  { %v381_v40 = vpop.xlane.xlu2 %380 }
 0x6df   :  { %1148 = vrcp.f32 %v381_v40 }
 0x6e5   :  { %v1149_v43 = vpop.eup %1148 }
 0x6e6   :  { %v383_v44 = vmul.f32 %v1149_v43, %v1147_v37  ;;  %v480_v0 = vpop.permute.xlu2 %479 }
 0x6e8   :  { %v384_v46 = vpack.c.bf16 %v383_v44, %v383_v44 }
 0x6ea   :  { %966 = vmatmul.msk.bf16.vlgmr.msra.gmra.mxu3 %vm311_vm15, %v384_v46 }
 0x6eb   :  { %668 = vmatpush.bf16.msra.mxu3 %v1019_v45 }
 0x6ef   :  { %669 = vmatpush.bf16.msra.mxu3 %v1011_v49 }
 0x6f3   :  { %670 = vmatpush.bf16.msra.mxu3 %v1003_v52  ;;  %v1111_v52 = vld [vmem:[%s1581_s11 + $0x28] sm:$0xff] }
 0x6f4   :  { %v434_v58 = vpop.f32.mrf.mxu0 }
 0x6f5   :  { %v438_v60 = vmul.f32 0.25, %v434_v58 }
 0x6f7   :  { %v439_v61 = vsel %vm281_vm14, %v438_v60, -1e+30  ;;  %671 = vmatpush.bf16.msra.mxu3 %v995_v57  ;;  %v1110_v57 = vld [vmem:[%s1581_s11 + $0x20] sm:$0xff] }
 0x6f8   :  { %v440_v62 = vsel %vm311_vm15, %v439_v61, -inf }
 0x6f9   :  { %441 = vmax.xlane.f32.xlu0 %v440_v62  ;;  %v1108_v62 = vld [vmem:[%s1581_s11 + $0x10] sm:$0xff] }
 0x6fa   :  { %969 = vmatmul.msk.bf16.vlgmr.msrb.gmra.mxu3 %vm192_vm10, %v480_v0 }
 0x6fc   :  { %v436_v2 = vpop.f32.mrf.mxu0 }
 0x70a   :  { %1021 = vmatmul.msk.bf16.vlgmr.msra.gmra.mxu3 %vm47_vm0, %v1311_v54 }
 0x70d   :  { %452 = vrot.lane.b32.xlu0 %v1390_v18, %s1176_s18 }
 0x76c   :  { %v442_v3 = vpop.xlane.xlu0 %441 }
 0x76d   :  { %v443_v4 = vsub.f32 %v439_v61, %v442_v3  ;;  %v405_v7 = vpop.f32.mrf.mxu3  ;;  %v1109_v61 = vld [vmem:[%s1581_s11 + $0x18] sm:$0xff]  ;;  %v1107_v3 = vld [vmem:[%s1581_s11 + $0x8] sm:$0xff] }
 0x76f   :  { %v444_v63 = vmul.f32 1.442695, %v443_v4 }
 0x771   :  { %1150 = vpow2.f32 %v444_v63 }
 0x775   :  { %v407_v8 = vpop.f32.mrf.mxu3 }
 0x777   :  { %v1151_v9 = vpop.eup %1150 }
 0x778   :  { %v446_v10 = vsel %vm311_vm15, %v1151_v9, 0.0 }
 0x779   :  { %447 = vadd.xlane.f32.xlu1 %v446_v10 }
 0x77d   :  { %v498_v11 = vpop.f32.mrf.mxu3 }
 0x77e   :  { %v502_v12 = vmul.f32 0.25, %v498_v11 }
 0x77f   :  { %v453_v56 = vpop.permute.xlu0 %452 }
 0x780   :  { %v458_v13 = vsel %vm327_vm9, %v453_v56, 0  ;;  %v503_v14 = vsel %vm281_vm14, %v502_v12, -1e+30 }
 0x781   :  { %467 = vmatpush.bf16.msra.mxu1 %v458_v13  ;;  %v504_v15 = vsel %vm311_vm15, %v503_v14, -inf }
 0x782   :  { %505 = vmax.xlane.f32.xlu2 %v504_v15 }
 0x785   :  { %v500_v16 = vpop.f32.mrf.mxu3  ;;  %655 = vmatpush.bf16.msrb.mxu1 %v1015_v59 }
 0x789   :  { %656 = vmatpush.bf16.msrb.mxu1 %v1007_v23 }
 0x78d   :  { %v1447_v17 = vpop.f32.mrf.mxu3  ;;  %657 = vmatpush.bf16.msrb.mxu1 %v999_v26 }
 0x791   :  { %658 = vmatpush.bf16.msrb.mxu1 %v991_v28 }
 0x792   :  { %410 = vrot.lane.b32.xlu1 %v405_v7, %s1170_s6 }
 0x795   :  { %v675_v19 = vpop.f32.mrf.mxu3 }
 0x7ec   :  { %v448_v29 = vpop.xlane.xlu1 %447 }
 0x7ed   :  { %1152 = vrcp.f32 %v448_v29 }
 0x7f3   :  { %v1153_v30 = vpop.eup %1152 }
 0x7f4   :  { %v450_v31 = vmul.f32 %v1153_v30, %v1151_v9  ;;  %v1106_v9 = vld [vmem:[%s1581_s11] sm:$0xff] }
 0x7f5   :  { %v506_v32 = vpop.xlane.xlu2 %505 }
 0x7f6   :  { %v451_v33 = vpack.c.bf16 %v450_v31, %v450_v31  ;;  %v507_v34 = vsub.f32 %v503_v14, %v506_v32 }
 0x7f8   :  { %v508_v35 = vmul.f32 1.442695, %v507_v34  ;;  %968 = vmatmul.msk.bf16.vlgmr.msra.gmra.mxu1 %vm311_vm15, %v451_v33 }
 0x7fa   :  { %1154 = vpow2.f32 %v508_v35 }
 0x800   :  { %v1155_v36 = vpop.eup %1154 }
 0x801   :  { %v510_v37 = vsel %vm311_vm15, %v1155_v36, 0.0 }
 0x802   :  { %511 = vadd.xlane.f32.xlu2 %v510_v37 }
 0x804   :  { %v411_v38 = vpop.permute.xlu1 %410 }
 0x805   :  { %414 = vst.msk [vmem:[#allocation2] sm:$0xff] %vm413_vm1, %v411_v38 }
 0x808   :  { %1020 = vmatmul.msk.bf16.vlgmr.msrb.gmra.mxu1 %vm47_vm0, %v1311_v54  ;;  %v1113_v54 = vld [vmem:[%s1581_s11 + $0x38] sm:$0xff] }
 0x81a   :  { %516 = vrot.lane.b32.xlu2 %v1390_v18, %s1177_s19  ;;  %v1488_v18 = vld [vmem:[%s1582_s10] sm:$0x3] }
 0x81b   :  { %v607_v47 = vperm.slane %v1488_v18, 0 }
 0x875   :  { %v469_v39 = vpop.f32.mrf.mxu1  ;;  %v512_v40 = vpop.xlane.xlu2 %511 }
 0x876   :  { %1156 = vrcp.f32 %v512_v40  ;;  %474 = vrot.lane.b32.xlu0 %v469_v39, %s1168_s28  ;;  %v1097_v40 = vld [vmem:[%s1585_s7 + $0x18] sm:$0xff] }
 0x877   :  { %588 = vmatpush.bf16.msrb.mxu0 %v1097_v40 }
 0x87c   :  { %v1157_v41 = vpop.eup %1156 }
 0x87d   :  { %v514_v42 = vmul.f32 %v1157_v41, %v1155_v36  ;;  %v471_v43 = vpop.f32.mrf.mxu1  ;;  %v517_v44 = vpop.permute.xlu2 %516  ;;  %v608_v36 = vperm.slane %v1488_v18, 1  ;;  %v1096_v41 = vld [vmem:[%s1585_s7 + $0x10] sm:$0xff] }
 0x87e   :  { %v522_v45 = vsel %vm327_vm9, %v517_v44, 0  ;;  %589 = vmatpush.bf16.msrb.mxu0 %v1096_v41  ;;  %v1094_v43 = vld [vmem:[%s1585_s7] sm:$0xff]  ;;  %v1121_v44 = vld [vmem:[%s1581_s11 + $0x78] sm:$0xff] }
 0x87f   :  { %531 = vmatpush.bf16.msrb.mxu2 %v522_v45  ;;  %v515_v46 = vpack.c.bf16 %v514_v42, %v514_v42  ;;  %v1518_v37 = vadd.f32 %v1447_v17, %v608_v36  ;;  %v1095_v17 = vld [vmem:[%s1585_s7 + $0x8] sm:$0xff]  ;;  %v1120_v45 = vld [vmem:[%s1581_s11 + $0x70] sm:$0xff] }
 0x881   :  { %v1521_v38 = vmul.f32 0.70710677, %v1518_v37 }
 0x882   :  { %970 = vmatmul.msk.bf16.vlgmr.msrb.gmra.mxu2 %vm311_vm15, %v515_v46  ;;  %590 = vmatpush.bf16.msrb.mxu0 %v1095_v17 }
 0x883   :  { %891 = vmatpush.bf16.msra.mxu2 %v1113_v54  ;;  %v682_v39 = vand.u32 2147483647, %v1521_v38  ;;  %vm748_vm13 = vcmp.ge.f32.partialorder %v1521_v38, 0.0 }
 0x885   :  { %v660_v49 = vpop.f32.mrf.mxu1 }
 0x886   :  { %v661_v50 = vadd.f32 %v660_v49, %v607_v47  ;;  %591 = vmatpush.bf16.msrb.mxu0 %v1094_v43 }
 0x887   :  { %892 = vmatpush.bf16.msra.mxu2 %v1112_v48 }
 0x888   :  { %v679_v51 = vmul.f32 0.70710677, %v661_v50  ;;  %v677_v29 = vmul.f32 0.5, %v661_v50 }
 0x88a   :  { %v681_v53 = vand.u32 2147483647, %v679_v51  ;;  %vm747_vm6 = vcmp.ge.f32.partialorder %v679_v51, 0.0  ;;  %904 = vmatpush.bf16.msra.mxu0 %v1121_v44 }
 0x88b   :  { %893 = vmatpush.bf16.msra.mxu2 %v1111_v52 }
 0x88c   :  { %v683_v55 = vmul.f32 0.3275911, %v681_v53  ;;  %v735_v13 = vsub.f32 0.0, %v681_v53 }
 0x88d   :  { %v662_v58 = vpop.f32.mrf.mxu1 }
 0x88e   :  { %v685_v60 = vadd.f32 1.0, %v683_v55  ;;  %v737_v16 = vmul.f32 %v735_v13, %v681_v53  ;;  %905 = vmatpush.bf16.msra.mxu0 %v1120_v45 }
 0x88f   :  { %894 = vmatpush.bf16.msra.mxu2 %v1110_v57 }
 0x890   :  { %1158 = vrcp.f32 %v685_v60  ;;  %v698_v7 = vand.u32 2147483648, %v685_v60  ;;  %v696_v8 = vand.u32 2147483647, %v685_v60  ;;  %vm692_vm3 = vweird.f32 %v685_v60 }
 0x891   :  { %v739_v21 = vmul.f32 1.442695, %v737_v16 }
 0x892   :  { %v699_v11 = vor.u32 1.1754944e-38, %v698_v7  ;;  %vm697_vm5 = vcmp.eq.f32.partialorder %v696_v8, 8.507059e+37  ;;  %v1115_v8 = vld [vmem:[%s1581_s11 + $0x48] sm:$0xff] }
 0x893   :  { %895 = vmatpush.bf16.msra.mxu2 %v1109_v61  ;;  %1160 = vpow2.f32 %v739_v21 }
 0x896   :  { %v1159_v0 = vpop.eup %1158 }
 0x897   :  { %v688_v2 = vmul.f32 %v1159_v0, %v685_v60  ;;  %896 = vmatpush.bf16.msra.mxu2 %v1108_v62  ;;  %vm693_vm2 = vweird.f32 %v1159_v0  ;;  %v1119_v60 = vld [vmem:[%s1581_s11 + $0x68] sm:$0xff]  ;;  %v1118_v62 = vld [vmem:[%s1581_s11 + $0x60] sm:$0xff] }
 0x898   :  { %vm694_vm4 = vmor %vm692_vm3, %vm693_vm2  ;;  %906 = vmatpush.bf16.msra.mxu0 %v1119_v60 }
 0x899   :  { %v689_v4 = vsub.f32 1.0, %v688_v2  ;;  %v1161_v25 = vpop.eup %1160 }
 0x89b   :  { %v690_v63 = vmul.f32 %v1159_v0, %v689_v4  ;;  %897 = vmatpush.bf16.msra.mxu2 %v1107_v3  ;;  %v1117_v3 = vld [vmem:[%s1581_s11 + $0x58] sm:$0xff]  ;;  %v1116_v4 = vld [vmem:[%s1581_s11 + $0x50] sm:$0xff] }
 0x89c   :  { %907 = vmatpush.bf16.msra.mxu0 %v1118_v62 }
 0x89d   :  { %v691_v10 = vadd.f32 %v1159_v0, %v690_v63  ;;  %v736_v63 = vsub.f32 0.0, %v682_v39 }
 0x89f   :  { %v695_v12 = vsel %vm694_vm4, %v1159_v0, %v691_v10  ;;  %898 = vmatpush.bf16.msra.mxu2 %v1106_v9  ;;  %v738_v10 = vmul.f32 %v736_v63, %v682_v39 }
 0x8a0   :  { %v700_v56 = vsel %vm697_vm5, %v699_v11, %v695_v12  ;;  %908 = vmatpush.bf16.msra.mxu0 %v1117_v3  ;;  %v1114_v11 = vld [vmem:[%s1581_s11 + $0x40] sm:$0xff] }
 0x8a1   :  { %v717_v14 = vmul.f32 1.0614054, %v700_v56 }
 0x8a3   :  { %v719_v15 = vadd.f32 -1.4531521, %v717_v14 }
 0x8a4   :  { %909 = vmatpush.bf16.msra.mxu0 %v1116_v4 }
 0x8a5   :  { %v721_v19 = vmul.f32 %v719_v15, %v700_v56 }
 0x8a7   :  { %v723_v20 = vadd.f32 1.4214138, %v721_v19 }
 0x8a8   :  { %910 = vmatpush.bf16.msra.mxu0 %v1115_v8 }
 0x8a9   :  { %v725_v59 = vmul.f32 %v723_v20, %v700_v56 }
 0x8ab   :  { %v727_v5 = vadd.f32 -0.28449672, %v725_v59 }
 0x8ac   :  { %911 = vmatpush.bf16.msra.mxu0 %v1114_v11 }
 0x8ad   :  { %v729_v22 = vmul.f32 %v727_v5, %v700_v56 }
 0x8af   :  { %v731_v23 = vadd.f32 0.2548296, %v729_v22 }
 0x8b1   :  { %v733_v24 = vmul.f32 %v731_v23, %v700_v56  ;;  %v741_v56 = vmul.f32 1.442695, %v738_v10 }
 0x8b3   :  { %v743_v26 = vmul.f32 %v1161_v25, %v733_v24  ;;  %v678_v24 = vmul.f32 0.5, %v1518_v37 }
 0x8b5   :  { %v745_v6 = vsub.f32 1.0, %v743_v26 }
 0x8b7   :  { %v749_v27 = vsub.f32 0.0, %v745_v6 }
 0x8b9   :  { %v751_v28 = vsel %vm747_vm6, %v745_v6, %v749_v27 }
 0x8ba   :  { %v753_v30 = vadd.f32 1.0, %v751_v28  ;;  %v1136_v28 = vld [vmem:[%s1583_s12] ss:$0 sm:$0xff] }
 0x8bc   :  { %v755_v31 = vmul.f32 %v753_v30, %v677_v29  ;;  %v1137_v29 = vld [vmem:[%s1584_s8] ss:$0 sm:$0xff] }
 0x8be   :  { %v757_v32 = vpack.c.bf16 %v755_v31, %v755_v31 }
 0x8c0   :  { %899 = vmatmul.bf16.vlgmr.msra.gmra.mxu2 %v757_v32 }
 0x8e8   :  { %v475_v33 = vpop.permute.xlu0 %474 }
 0x8e9   :  { %478 = vst.msk [vmem:[#allocation2] sm:$0xff] %vm477_vm7, %v475_v33 }
 0x905   :  { %v533_v34 = vpop.f32.mrf.mxu2 }
 0x906   :  { %538 = vrot.lane.b32.xlu0 %v533_v34, %s1167_s4 }
 0x90d   :  { %v535_v35 = vpop.f32.mrf.mxu2 }
 0x90e   :  { %919 = vrot.lane.b32.xlu0 %v1251_v1, %s1169_s2  ;;  %v684_v1 = vmul.f32 0.3275911, %v682_v39 }
 0x910   :  { %v686_v42 = vadd.f32 1.0, %v684_v1 }
 0x912   :  { %1162 = vrcp.f32 %v686_v42  ;;  %v713_v51 = vand.u32 2147483648, %v686_v42  ;;  %vm707_vm9 = vweird.f32 %v686_v42  ;;  %v711_v52 = vand.u32 2147483647, %v686_v42 }
 0x913   :  { %1164 = vpow2.f32 %v741_v56 }
 0x914   :  { %v714_v55 = vor.u32 1.1754944e-38, %v713_v51  ;;  %vm712_vm11 = vcmp.eq.f32.partialorder %v711_v52, 8.507059e+37 }
 0x918   :  { %v1163_v46 = vpop.eup %1162 }
 0x919   :  { %v703_v54 = vmul.f32 %v1163_v46, %v686_v42  ;;  %vm708_vm8 = vweird.f32 %v1163_v46  ;;  %v1165_v16 = vpop.eup %1164 }
 0x91a   :  { %vm709_vm10 = vmor %vm707_vm9, %vm708_vm8 }
 0x91b   :  { %v704_v47 = vsub.f32 1.0, %v703_v54 }
 0x91d   :  { %v705_v48 = vmul.f32 %v1163_v46, %v704_v47 }
 0x91f   :  { %v706_v50 = vadd.f32 %v1163_v46, %v705_v48 }
 0x921   :  { %v710_v53 = vsel %vm709_vm10, %v1163_v46, %v706_v50 }
 0x922   :  { %v715_v57 = vsel %vm712_vm11, %v714_v55, %v710_v53 }
 0x923   :  { %v718_v58 = vmul.f32 1.0614054, %v715_v57 }
 0x925   :  { %v720_v61 = vadd.f32 -1.4531521, %v718_v58 }
 0x927   :  { %v722_v0 = vmul.f32 %v720_v61, %v715_v57 }
 0x929   :  { %v724_v2 = vadd.f32 1.4214138, %v722_v0 }
 0x92b   :  { %v726_v7 = vmul.f32 %v724_v2, %v715_v57 }
 0x92d   :  { %v728_v9 = vadd.f32 -0.28449672, %v726_v7 }
 0x92f   :  { %v730_v12 = vmul.f32 %v728_v9, %v715_v57 }
 0x931   :  { %v732_v13 = vadd.f32 0.2548296, %v730_v12 }
 0x933   :  { %v734_v14 = vmul.f32 %v732_v13, %v715_v57 }
 0x935   :  { %v744_v19 = vmul.f32 %v1165_v16, %v734_v14 }
 0x937   :  { %v746_v20 = vsub.f32 1.0, %v744_v19 }
 0x939   :  { %v750_v5 = vsub.f32 0.0, %v746_v20 }
 0x93b   :  { %v752_v22 = vsel %vm748_vm13, %v746_v20, %v750_v5 }
 0x93c   :  { %v754_v23 = vadd.f32 1.0, %v752_v22 }
 0x93e   :  { %v756_v25 = vmul.f32 %v754_v23, %v678_v24 }
 0x940   :  { %v758_v26 = vpack.c.bf16 %v756_v25, %v756_v25 }
 0x943   :  { %v900_v18 = vpop.f32.mrf.mxu2 }
 0x944   :  { %v901_v30 = vadd.f32 %v1136_v28, %v900_v18 }
 0x94b   :  { %v902_v49 = vpop.f32.mrf.mxu2 }
 0x978   :  { %v539_v15 = vpop.permute.xlu0 %538 }
 0x979   :  { %542 = vst.msk [vmem:[#allocation2] sm:$0xff] %vm541_vm12, %v539_v15 }
 0x980   :  { %v543_v21 = vld [vmem:[#allocation2] sm:$0xff]  ;;  %v920_v34 = vpop.permute.xlu0 %919 }
 0x981   :  { %v544_v59 = vpack.c.bf16 %v543_v21, %v543_v21 }
 0x983   :  { %987 = vmatmul.msk.bf16.vlgmr.msrb.gmra.mxu0 %vm47_vm0, %v544_v59 }
 0x993   :  { %912 = vmatmul.bf16.vlgmr.msra.gmra.mxu0 %v758_v26 }
 0xa00   :  { %v593_v6 = vpop.f32.mrf.mxu0 }
 0xa01   :  { %v594_v32 = vadd.f32 %v1137_v29, %v593_v6 }
 0xa08   :  { %v595_v27 = vpop.f32.mrf.mxu0 }
 0xa10   :  { %v913_v31 = vpop.f32.mrf.mxu0 }
 0xa11   :  { %v914_v33 = vadd.f32 %v913_v31, %v901_v30 }
 0xa13   :  { %v917_v35 = vadd.f32 %v914_v33, %v594_v32 }
 0xa15   :  { %v922_v36 = vsel %vm47_vm0, %v917_v35, %v920_v34 }
 0xa16   :  { %v923_v37 = vpack.c.bf16 %v922_v36, %v922_v36 }
 0xa18   :  { %924 = vst [vmem:[%s1586_s13] sm:$0xf] %v923_v37  ;;  %v915_v38 = vpop.f32.mrf.mxu0 }

</bundles_post_ra>
